<compile_context>
chip_gen: v7x
topology: tpu7x:2x2x1
jax: 0.10.0
libtpu: 0.0.40
codegen_flags: <defaults>
</compile_context>

<pallas_src>
import functools

import jax
import jax.numpy as jnp
from jax.experimental import pallas as pl
from jax.experimental.pallas import tpu as pltpu

# ----------------------------- model hyper-params -----------------------------
INPUT_SIZE = 2
HIDDEN_SIZE = 32          # module default is 128; small demo size, structure identical
NUM_CLASSES = 9
NUM_LAYERS = 2            # kernel below is specialized to the module's 2 layers
BATCH = 2
SEQ = 8


# ----------------------------- fused Pallas kernel -----------------------------
def _birnn_kernel(x_ref,            # (T*B, Din)   time-major flattened input
                  wih1_ref,         # (Din, 8H)    [l1 fwd | l1 bwd] input weights
                  b1_ref,           # (1, 8H)      [l1 fwd | l1 bwd] biases
                  whh1f_ref,        # (H, 4H)
                  whh1b_ref,        # (H, 4H)
                  w2fh_ref,         # (2H, 4H)     vstack(l2fwd W_ih[:H], l2fwd W_hh)
                  w2b_ref,          # (H, 8H)      [l2fwd W_ih[H:] | l2bwd W_ih[H:]]
                  b2_ref,           # (1, 8H)      [l2 fwd | l2 bwd] biases
                  w2tb_ref,         # (H, 4H)      l2bwd W_ih[:H]  (h1f part)
                  fcw_ref,          # (2H, C)
                  fcb_ref,          # (1, C)
                  out_ref,          # (B, C)
                  h1b_scr,          # VMEM scratch (T*B, H)
                  *, T, B, H):
    f32 = jnp.float32
    G = 4 * H

    def dot(a, b):
        return jnp.dot(a, b, preferred_element_type=f32)

    def cell(gates, c):
        # Full-slab transcendentals (one 128-lane tile each), slice i/f/g/o afterwards.
        sg = jax.nn.sigmoid(gates)
        tg = jnp.tanh(gates)
        i, f, o = sg[:, 0:H], sg[:, H:2 * H], sg[:, 3 * H:4 * H]
        g = tg[:, 2 * H:3 * H]
        c_new = f * c + i * g
        h_new = o * jnp.tanh(c_new)
        return h_new, c_new

    # ---- prologue: ALL layer-1 input projections + biases in one batched matmul ----------
    xp = dot(x_ref[...], wih1_ref[...]) + b1_ref[...]        # (T*B, 8H); cols [fwd | bwd]

    whh1_f = whh1f_ref[...]
    whh1_b = whh1b_ref[...]
    zeros = jnp.zeros((B, H), f32)

    # ---- layer-1 backward recurrence (time reversal via static indices) ------------------
    h1b, c1b = zeros, zeros
    for t in range(T - 1, -1, -1):
        gates = xp[t * B:(t + 1) * B, G:2 * G] + dot(h1b, whh1_b)
        h1b, c1b = cell(gates, c1b)
        h1b_scr[t * B:(t + 1) * B, :] = h1b

    # Batched projection of ALL layer-1 backward hiddens into layer-2 gate space (+ biases):
    # cols [0:4H] -> layer-2 fwd contribution at every t; cols [4H:8H] -> layer-2 bwd (row T-1).
    p2 = dot(h1b_scr[...], w2b_ref[...]) + b2_ref[...]       # (T*B, 8H)

    # ---- layer-1 forward fused with layer-2 forward ---------------------------------------
    w2fh = w2fh_ref[...]                                     # (2H, 4H): rows [h1f | h2f]
    h1f, c1f = zeros, zeros
    h2f, c2f = zeros, zeros
    for t in range(T):
        gates1 = xp[t * B:(t + 1) * B, 0:G] + dot(h1f, whh1_f)
        h1f, c1f = cell(gates1, c1f)
        # One K-concatenated MXU push per layer-2 cell: [h1f | h2f] @ vstack(W_ih_top, W_hh)
        gates2 = dot(jnp.concatenate([h1f, h2f], axis=1), w2fh) + p2[t * B:(t + 1) * B, 0:G]
        h2f, c2f = cell(gates2, c2f)

    # ---- layer-2 backward: only its t = T-1 output feeds the FC ---------------------------
    # First step from h0 = c0 = 0  =>  f * c0 == 0 and h0 @ W_hh == 0.
    gates2b = dot(h1f, w2tb_ref[...]) + p2[(T - 1) * B:T * B, G:2 * G]
    sg = jax.nn.sigmoid(gates2b)
    tg = jnp.tanh(gates2b)
    c2b = sg[:, 0:H] * tg[:, 2 * H:3 * H]
    h2b = sg[:, 3 * H:4 * H] * jnp.tanh(c2b)

    # ---- fused FC on out[:, -1, :] = concat([h2f, h2b]) -----------------------------------
    logits = dot(jnp.concatenate([h2f, h2b], axis=1), fcw_ref[...]) + fcb_ref[...]
    out_ref[...] = logits.astype(out_ref.dtype)


# ----------------------------- one-time weight packing --------------------------
def prepare_params(params):
    """Pack weights once so the per-call wrapper does no weight math."""
    H = HIDDEN_SIZE
    (l1f, l1b), (l2f, l2b) = params["layers"]
    wih1_f, whh1_f, b1_f = l1f
    wih1_b, whh1_b, b1_b = l1b
    wih2_f, whh2_f, b2_f = l2f
    wih2_b, _whh2_b, b2_b = l2b          # layer-2 bwd never needs its W_hh (h0 == 0)
    return {
        "wih1": jnp.concatenate([wih1_f, wih1_b], axis=1),          # (Din, 8H)
        "b1": jnp.concatenate([b1_f, b1_b], axis=1),                # (1, 8H)
        "whh1_f": whh1_f,                                           # (H, 4H)
        "whh1_b": whh1_b,                                           # (H, 4H)
        "w2fh": jnp.concatenate([wih2_f[:H], whh2_f], axis=0),      # (2H, 4H)
        "w2b": jnp.concatenate([wih2_f[H:], wih2_b[H:]], axis=1),   # (H, 8H)
        "b2": jnp.concatenate([b2_f, b2_b], axis=1),                # (1, 8H)
        "w2tb": wih2_b[:H],                                         # (H, 4H)
        "fc_w": params["fc_w"],                                     # (2H, C)
        "fc_b": params["fc_b"],                                     # (1, C)
    }


# ----------------------------- forward wrapper ----------------------------------
@jax.jit
def birnn_forward(x_btd, packed):
    """Pallas equivalent of BiRNN.forward: 2-layer bidirectional LSTM + Linear on last step."""
    B, T, Din = x_btd.shape
    H = HIDDEN_SIZE
    # Only per-call data prep: time-major flatten so row r = t*B + b (cheap, fused under jit).
    x_flat = jnp.transpose(x_btd, (1, 0, 2)).reshape(T * B, Din).astype(jnp.float32)

    kernel = functools.partial(_birnn_kernel, T=T, B=B, H=H)
    return pl.pallas_call(
        kernel,
        out_shape=jax.ShapeDtypeStruct((B, NUM_CLASSES), jnp.float32),
        scratch_shapes=[pltpu.VMEM((T * B, H), jnp.float32)],
    )(x_flat, packed["wih1"], packed["b1"], packed["whh1_f"], packed["whh1_b"],
      packed["w2fh"], packed["w2b"], packed["b2"], packed["w2tb"],
      packed["fc_w"], packed["fc_b"])


# ----------------------------- parameter init ----------------------------------
def init_params(key):
    """Synthetic parameters matching nn.LSTM/Linear shapes.

    Per layer l, per direction d: W_ih (D_in_l, 4H), W_hh (H, 4H), bias (1, 4H)
    (PyTorch stores (4H, D) and two biases; we store the transposed, pre-summed
    equivalents). Gate order: i, f, g, o (PyTorch convention).
    """
    params = {"layers": []}
    scale = 1.0 / jnp.sqrt(jnp.float32(HIDDEN_SIZE))
    for layer in range(NUM_LAYERS):
        d_in = INPUT_SIZE if layer == 0 else 2 * HIDDEN_SIZE
        dirs = []
        for _direction in range(2):
            key, k1, k2, k3 = jax.random.split(key, 4)
            wih = jax.random.uniform(k1, (d_in, 4 * HIDDEN_SIZE), jnp.float32, -scale, scale)
            whh = jax.random.uniform(k2, (HIDDEN_SIZE, 4 * HIDDEN_SIZE), jnp.float32, -scale, scale)
            b = jax.random.uniform(k3, (1, 4 * HIDDEN_SIZE), jnp.float32, -scale, scale)
            dirs.append((wih, whh, b))
        params["layers"].append(tuple(dirs))
    key, k1, k2 = jax.random.split(key, 3)
    params["fc_w"] = jax.random.uniform(
        k1, (2 * HIDDEN_SIZE, NUM_CLASSES), jnp.float32, -scale, scale)
    params["fc_b"] = jax.random.uniform(k2, (1, NUM_CLASSES), jnp.float32, -scale, scale)
    return params


# ----------------------------- pure-JAX reference ------------------------------
def _lstm_dir_ref(x_tbd, wih, whh, b):
    B = x_tbd.shape[1]
    H = whh.shape[0]

    def step(carry, x_t):
        h, c = carry
        gates = x_t @ wih + h @ whh + b
        i = jax.nn.sigmoid(gates[:, 0 * H:1 * H])
        f = jax.nn.sigmoid(gates[:, 1 * H:2 * H])
        g = jnp.tanh(gates[:, 2 * H:3 * H])
        o = jax.nn.sigmoid(gates[:, 3 * H:4 * H])
        c = f * c + i * g
        h = o * jnp.tanh(c)
        return (h, c), h

    init = (jnp.zeros((B, H), jnp.float32), jnp.zeros((B, H), jnp.float32))
    _, hs = jax.lax.scan(step, init, x_tbd)
    return hs


def birnn_forward_ref(x_btd, params):
    x = jnp.transpose(x_btd, (1, 0, 2)).astype(jnp.float32)
    for (fwd_p, bwd_p) in params["layers"]:
        out_f = _lstm_dir_ref(x, *fwd_p)
        out_b = _lstm_dir_ref(x[::-1], *bwd_p)[::-1]
        x = jnp.concatenate([out_f, out_b], axis=-1)
    return x[-1] @ params["fc_w"] + params["fc_b"]


# ----------------------------- main --------------------------------------------
if __name__ == "__main__":
    key = jax.random.PRNGKey(0)
    key, xk = jax.random.split(key)
    x = jax.random.normal(xk, (BATCH, SEQ, INPUT_SIZE), jnp.float32)

    params = init_params(key)
    packed = jax.tree_util.tree_map(jax.block_until_ready, prepare_params(params))

    out = jax.block_until_ready(birnn_forward(x, packed))
    assert out.shape == (BATCH, NUM_CLASSES), out.shape

    ref = jax.block_until_ready(birnn_forward_ref(x, params))
    assert jnp.allclose(out, ref, atol=1e-4, rtol=1e-4), (out, ref)

    print("KERNEL_OK")
</pallas_src>

<mosaic_0001>
module attributes {stable_mosaic.version = 11 : i64} {
  func.func @_birnn_kernel(%arg0: memref<16x2xf32, #tpu.memory_space<vmem>>, %arg1: memref<2x256xf32, #tpu.memory_space<vmem>>, %arg2: memref<1x256xf32, #tpu.memory_space<vmem>>, %arg3: memref<32x128xf32, #tpu.memory_space<vmem>>, %arg4: memref<32x128xf32, #tpu.memory_space<vmem>>, %arg5: memref<64x128xf32, #tpu.memory_space<vmem>>, %arg6: memref<32x256xf32, #tpu.memory_space<vmem>>, %arg7: memref<1x256xf32, #tpu.memory_space<vmem>>, %arg8: memref<32x128xf32, #tpu.memory_space<vmem>>, %arg9: memref<64x9xf32, #tpu.memory_space<vmem>>, %arg10: memref<1x9xf32, #tpu.memory_space<vmem>>, %arg11: memref<2x9xf32, #tpu.memory_space<vmem>>, %arg12: memref<16x32xf32, #tpu.memory_space<vmem>>) attributes {dimension_semantics = [], scalar_prefetch = 0 : i64, scratch_operands = 1 : i64, tpu.core_type = #tpu.core_type<tc>} {
    %c0 = arith.constant 0 : index
    %c0_0 = arith.constant 0 : index
    %0 = vector.load %arg0[%c0, %c0_0] : memref<16x2xf32, #tpu.memory_space<vmem>>, vector<16x2xf32>
    %c0_1 = arith.constant 0 : index
    %c0_2 = arith.constant 0 : index
    %1 = vector.load %arg1[%c0_1, %c0_2] : memref<2x256xf32, #tpu.memory_space<vmem>>, vector<2x256xf32>
    %cst = arith.constant dense<0.000000e+00> : vector<16x256xf32>
    %2 = tpu.matmul %0, %1, %cst {dimension_numbers = #tpu.dot_dimension_numbers<[1], [0], [0], [1], [0, 0, 1, 1], [], []>} : vector<16x2xf32>, vector<2x256xf32>, vector<16x256xf32> -> vector<16x256xf32>
    %c0_3 = arith.constant 0 : index
    %c0_4 = arith.constant 0 : index
    %3 = vector.load %arg2[%c0_3, %c0_4] : memref<1x256xf32, #tpu.memory_space<vmem>>, vector<1x256xf32>
    %4 = vector.broadcast %3 : vector<1x256xf32> to vector<16x256xf32>
    %5 = arith.addf %2, %4 : vector<16x256xf32>
    %c0_5 = arith.constant 0 : index
    %c0_6 = arith.constant 0 : index
    %6 = vector.load %arg3[%c0_5, %c0_6] : memref<32x128xf32, #tpu.memory_space<vmem>>, vector<32x128xf32>
    %c0_7 = arith.constant 0 : index
    %c0_8 = arith.constant 0 : index
    %7 = vector.load %arg4[%c0_7, %c0_8] : memref<32x128xf32, #tpu.memory_space<vmem>>, vector<32x128xf32>
    %cst_9 = arith.constant 0.000000e+00 : f32
    %8 = vector.broadcast %cst_9 : f32 to vector<2x32xf32>
    %9 = vector.extract_strided_slice %5 {offsets = [14, 128], sizes = [2, 128], strides = [1, 1]} : vector<16x256xf32> to vector<2x128xf32>
    %cst_10 = arith.constant dense<0.000000e+00> : vector<2x128xf32>
    %10 = tpu.matmul %8, %7, %cst_10 {dimension_numbers = #tpu.dot_dimension_numbers<[1], [0], [0], [1], [0, 0, 1, 1], [], []>} : vector<2x32xf32>, vector<32x128xf32>, vector<2x128xf32> -> vector<2x128xf32>
    %11 = arith.addf %9, %10 : vector<2x128xf32>
    %12 = arith.negf %11 : vector<2x128xf32>
    %13 = math.exp %12 : vector<2x128xf32>
    %cst_11 = arith.constant 1.000000e+00 : f32
    %14 = vector.broadcast %cst_11 : f32 to vector<2x128xf32>
    %15 = arith.addf %14, %13 : vector<2x128xf32>
    %16 = arith.divf %14, %15 : vector<2x128xf32>
    %17 = math.tanh %11 : vector<2x128xf32>
    %18 = vector.extract_strided_slice %16 {offsets = [0, 0], sizes = [2, 32], strides = [1, 1]} : vector<2x128xf32> to vector<2x32xf32>
    %19 = vector.extract_strided_slice %16 {offsets = [0, 32], sizes = [2, 32], strides = [1, 1]} : vector<2x128xf32> to vector<2x32xf32>
    %20 = vector.extract_strided_slice %16 {offsets = [0, 96], sizes = [2, 32], strides = [1, 1]} : vector<2x128xf32> to vector<2x32xf32>
    %21 = vector.extract_strided_slice %17 {offsets = [0, 64], sizes = [2, 32], strides = [1, 1]} : vector<2x128xf32> to vector<2x32xf32>
    %22 = arith.mulf %19, %8 : vector<2x32xf32>
    %23 = arith.mulf %18, %21 : vector<2x32xf32>
    %24 = arith.addf %22, %23 : vector<2x32xf32>
    %25 = math.tanh %24 : vector<2x32xf32>
    %26 = arith.mulf %20, %25 : vector<2x32xf32>
    %c14 = arith.constant 14 : index
    %c0_12 = arith.constant 0 : index
    %27 = vector.load %arg12[%c14, %c0_12] : memref<16x32xf32, #tpu.memory_space<vmem>>, vector<2x32xf32>
    tpu.vector_store %arg12[%c14, %c0_12], %26 {strides = array<i32>} : memref<16x32xf32, #tpu.memory_space<vmem>>, vector<2x32xf32>,
    %28 = vector.extract_strided_slice %5 {offsets = [12, 128], sizes = [2, 128], strides = [1, 1]} : vector<16x256xf32> to vector<2x128xf32>
    %cst_13 = arith.constant dense<0.000000e+00> : vector<2x128xf32>
    %29 = tpu.matmul %26, %7, %cst_13 {dimension_numbers = #tpu.dot_dimension_numbers<[1], [0], [0], [1], [0, 0, 1, 1], [], []>} : vector<2x32xf32>, vector<32x128xf32>, vector<2x128xf32> -> vector<2x128xf32>
    %30 = arith.addf %28, %29 : vector<2x128xf32>
    %31 = arith.negf %30 : vector<2x128xf32>
    %32 = math.exp %31 : vector<2x128xf32>
    %cst_14 = arith.constant 1.000000e+00 : f32
    %33 = vector.broadcast %cst_14 : f32 to vector<2x128xf32>
    %34 = arith.addf %33, %32 : vector<2x128xf32>
    %35 = arith.divf %33, %34 : vector<2x128xf32>
    %36 = math.tanh %30 : vector<2x128xf32>
    %37 = vector.extract_strided_slice %35 {offsets = [0, 0], sizes = [2, 32], strides = [1, 1]} : vector<2x128xf32> to vector<2x32xf32>
    %38 = vector.extract_strided_slice %35 {offsets = [0, 32], sizes = [2, 32], strides = [1, 1]} : vector<2x128xf32> to vector<2x32xf32>
    %39 = vector.extract_strided_slice %35 {offsets = [0, 96], sizes = [2, 32], strides = [1, 1]} : vector<2x128xf32> to vector<2x32xf32>
    %40 = vector.extract_strided_slice %36 {offsets = [0, 64], sizes = [2, 32], strides = [1, 1]} : vector<2x128xf32> to vector<2x32xf32>
    %41 = arith.mulf %38, %24 : vector<2x32xf32>
    %42 = arith.mulf %37, %40 : vector<2x32xf32>
    %43 = arith.addf %41, %42 : vector<2x32xf32>
    %44 = math.tanh %43 : vector<2x32xf32>
    %45 = arith.mulf %39, %44 : vector<2x32xf32>
    %c12 = arith.constant 12 : index
    %c0_15 = arith.constant 0 : index
    %46 = vector.load %arg12[%c12, %c0_15] : memref<16x32xf32, #tpu.memory_space<vmem>>, vector<2x32xf32>
    tpu.vector_store %arg12[%c12, %c0_15], %45 {strides = array<i32>} : memref<16x32xf32, #tpu.memory_space<vmem>>, vector<2x32xf32>,
    %47 = vector.extract_strided_slice %5 {offsets = [10, 128], sizes = [2, 128], strides = [1, 1]} : vector<16x256xf32> to vector<2x128xf32>
    %cst_16 = arith.constant dense<0.000000e+00> : vector<2x128xf32>
    %48 = tpu.matmul %45, %7, %cst_16 {dimension_numbers = #tpu.dot_dimension_numbers<[1], [0], [0], [1], [0, 0, 1, 1], [], []>} : vector<2x32xf32>, vector<32x128xf32>, vector<2x128xf32> -> vector<2x128xf32>
    %49 = arith.addf %47, %48 : vector<2x128xf32>
    %50 = arith.negf %49 : vector<2x128xf32>
    %51 = math.exp %50 : vector<2x128xf32>
    %cst_17 = arith.constant 1.000000e+00 : f32
    %52 = vector.broadcast %cst_17 : f32 to vector<2x128xf32>
    %53 = arith.addf %52, %51 : vector<2x128xf32>
    %54 = arith.divf %52, %53 : vector<2x128xf32>
    %55 = math.tanh %49 : vector<2x128xf32>
    %56 = vector.extract_strided_slice %54 {offsets = [0, 0], sizes = [2, 32], strides = [1, 1]} : vector<2x128xf32> to vector<2x32xf32>
    %57 = vector.extract_strided_slice %54 {offsets = [0, 32], sizes = [2, 32], strides = [1, 1]} : vector<2x128xf32> to vector<2x32xf32>
    %58 = vector.extract_strided_slice %54 {offsets = [0, 96], sizes = [2, 32], strides = [1, 1]} : vector<2x128xf32> to vector<2x32xf32>
    %59 = vector.extract_strided_slice %55 {offsets = [0, 64], sizes = [2, 32], strides = [1, 1]} : vector<2x128xf32> to vector<2x32xf32>
    %60 = arith.mulf %57, %43 : vector<2x32xf32>
    %61 = arith.mulf %56, %59 : vector<2x32xf32>
    %62 = arith.addf %60, %61 : vector<2x32xf32>
    %63 = math.tanh %62 : vector<2x32xf32>
    %64 = arith.mulf %58, %63 : vector<2x32xf32>
    %c10 = arith.constant 10 : index
    %c0_18 = arith.constant 0 : index
    %65 = vector.load %arg12[%c10, %c0_18] : memref<16x32xf32, #tpu.memory_space<vmem>>, vector<2x32xf32>
    tpu.vector_store %arg12[%c10, %c0_18], %64 {strides = array<i32>} : memref<16x32xf32, #tpu.memory_space<vmem>>, vector<2x32xf32>,
    %66 = vector.extract_strided_slice %5 {offsets = [8, 128], sizes = [2, 128], strides = [1, 1]} : vector<16x256xf32> to vector<2x128xf32>
    %cst_19 = arith.constant dense<0.000000e+00> : vector<2x128xf32>
    %67 = tpu.matmul %64, %7, %cst_19 {dimension_numbers = #tpu.dot_dimension_numbers<[1], [0], [0], [1], [0, 0, 1, 1], [], []>} : vector<2x32xf32>, vector<32x128xf32>, vector<2x128xf32> -> vector<2x128xf32>
    %68 = arith.addf %66, %67 : vector<2x128xf32>
    %69 = arith.negf %68 : vector<2x128xf32>
    %70 = math.exp %69 : vector<2x128xf32>
    %cst_20 = arith.constant 1.000000e+00 : f32
    %71 = vector.broadcast %cst_20 : f32 to vector<2x128xf32>
    %72 = arith.addf %71, %70 : vector<2x128xf32>
    %73 = arith.divf %71, %72 : vector<2x128xf32>
    %74 = math.tanh %68 : vector<2x128xf32>
    %75 = vector.extract_strided_slice %73 {offsets = [0, 0], sizes = [2, 32], strides = [1, 1]} : vector<2x128xf32> to vector<2x32xf32>
    %76 = vector.extract_strided_slice %73 {offsets = [0, 32], sizes = [2, 32], strides = [1, 1]} : vector<2x128xf32> to vector<2x32xf32>
    %77 = vector.extract_strided_slice %73 {offsets = [0, 96], sizes = [2, 32], strides = [1, 1]} : vector<2x128xf32> to vector<2x32xf32>
    %78 = vector.extract_strided_slice %74 {offsets = [0, 64], sizes = [2, 32], strides = [1, 1]} : vector<2x128xf32> to vector<2x32xf32>
    %79 = arith.mulf %76, %62 : vector<2x32xf32>
    %80 = arith.mulf %75, %78 : vector<2x32xf32>
    %81 = arith.addf %79, %80 : vector<2x32xf32>
    %82 = math.tanh %81 : vector<2x32xf32>
    %83 = arith.mulf %77, %82 : vector<2x32xf32>
    %c8 = arith.constant 8 : index
    %c0_21 = arith.constant 0 : index
    %84 = vector.load %arg12[%c8, %c0_21] : memref<16x32xf32, #tpu.memory_space<vmem>>, vector<2x32xf32>
    tpu.vector_store %arg12[%c8, %c0_21], %83 {strides = array<i32>} : memref<16x32xf32, #tpu.memory_space<vmem>>, vector<2x32xf32>,
    %85 = vector.extract_strided_slice %5 {offsets = [6, 128], sizes = [2, 128], strides = [1, 1]} : vector<16x256xf32> to vector<2x128xf32>
    %cst_22 = arith.constant dense<0.000000e+00> : vector<2x128xf32>
    %86 = tpu.matmul %83, %7, %cst_22 {dimension_numbers = #tpu.dot_dimension_numbers<[1], [0], [0], [1], [0, 0, 1, 1], [], []>} : vector<2x32xf32>, vector<32x128xf32>, vector<2x128xf32> -> vector<2x128xf32>
    %87 = arith.addf %85, %86 : vector<2x128xf32>
    %88 = arith.negf %87 : vector<2x128xf32>
    %89 = math.exp %88 : vector<2x128xf32>
    %cst_23 = arith.constant 1.000000e+00 : f32
    %90 = vector.broadcast %cst_23 : f32 to vector<2x128xf32>
    %91 = arith.addf %90, %89 : vector<2x128xf32>
    %92 = arith.divf %90, %91 : vector<2x128xf32>
    %93 = math.tanh %87 : vector<2x128xf32>
    %94 = vector.extract_strided_slice %92 {offsets = [0, 0], sizes = [2, 32], strides = [1, 1]} : vector<2x128xf32> to vector<2x32xf32>
    %95 = vector.extract_strided_slice %92 {offsets = [0, 32], sizes = [2, 32], strides = [1, 1]} : vector<2x128xf32> to vector<2x32xf32>
    %96 = vector.extract_strided_slice %92 {offsets = [0, 96], sizes = [2, 32], strides = [1, 1]} : vector<2x128xf32> to vector<2x32xf32>
    %97 = vector.extract_strided_slice %93 {offsets = [0, 64], sizes = [2, 32], strides = [1, 1]} : vector<2x128xf32> to vector<2x32xf32>
    %98 = arith.mulf %95, %81 : vector<2x32xf32>
    %99 = arith.mulf %94, %97 : vector<2x32xf32>
    %100 = arith.addf %98, %99 : vector<2x32xf32>
    %101 = math.tanh %100 : vector<2x32xf32>
    %102 = arith.mulf %96, %101 : vector<2x32xf32>
    %c6 = arith.constant 6 : index
    %c0_24 = arith.constant 0 : index
    %103 = vector.load %arg12[%c6, %c0_24] : memref<16x32xf32, #tpu.memory_space<vmem>>, vector<2x32xf32>
    tpu.vector_store %arg12[%c6, %c0_24], %102 {strides = array<i32>} : memref<16x32xf32, #tpu.memory_space<vmem>>, vector<2x32xf32>,
    %104 = vector.extract_strided_slice %5 {offsets = [4, 128], sizes = [2, 128], strides = [1, 1]} : vector<16x256xf32> to vector<2x128xf32>
    %cst_25 = arith.constant dense<0.000000e+00> : vector<2x128xf32>
    %105 = tpu.matmul %102, %7, %cst_25 {dimension_numbers = #tpu.dot_dimension_numbers<[1], [0], [0], [1], [0, 0, 1, 1], [], []>} : vector<2x32xf32>, vector<32x128xf32>, vector<2x128xf32> -> vector<2x128xf32>
    %106 = arith.addf %104, %105 : vector<2x128xf32>
    %107 = arith.negf %106 : vector<2x128xf32>
    %108 = math.exp %107 : vector<2x128xf32>
    %cst_26 = arith.constant 1.000000e+00 : f32
    %109 = vector.broadcast %cst_26 : f32 to vector<2x128xf32>
    %110 = arith.addf %109, %108 : vector<2x128xf32>
    %111 = arith.divf %109, %110 : vector<2x128xf32>
    %112 = math.tanh %106 : vector<2x128xf32>
    %113 = vector.extract_strided_slice %111 {offsets = [0, 0], sizes = [2, 32], strides = [1, 1]} : vector<2x128xf32> to vector<2x32xf32>
    %114 = vector.extract_strided_slice %111 {offsets = [0, 32], sizes = [2, 32], strides = [1, 1]} : vector<2x128xf32> to vector<2x32xf32>
    %115 = vector.extract_strided_slice %111 {offsets = [0, 96], sizes = [2, 32], strides = [1, 1]} : vector<2x128xf32> to vector<2x32xf32>
    %116 = vector.extract_strided_slice %112 {offsets = [0, 64], sizes = [2, 32], strides = [1, 1]} : vector<2x128xf32> to vector<2x32xf32>
    %117 = arith.mulf %114, %100 : vector<2x32xf32>
    %118 = arith.mulf %113, %116 : vector<2x32xf32>
    %119 = arith.addf %117, %118 : vector<2x32xf32>
    %120 = math.tanh %119 : vector<2x32xf32>
    %121 = arith.mulf %115, %120 : vector<2x32xf32>
    %c4 = arith.constant 4 : index
    %c0_27 = arith.constant 0 : index
    %122 = vector.load %arg12[%c4, %c0_27] : memref<16x32xf32, #tpu.memory_space<vmem>>, vector<2x32xf32>
    tpu.vector_store %arg12[%c4, %c0_27], %121 {strides = array<i32>} : memref<16x32xf32, #tpu.memory_space<vmem>>, vector<2x32xf32>,
    %123 = vector.extract_strided_slice %5 {offsets = [2, 128], sizes = [2, 128], strides = [1, 1]} : vector<16x256xf32> to vector<2x128xf32>
    %cst_28 = arith.constant dense<0.000000e+00> : vector<2x128xf32>
    %124 = tpu.matmul %121, %7, %cst_28 {dimension_numbers = #tpu.dot_dimension_numbers<[1], [0], [0], [1], [0, 0, 1, 1], [], []>} : vector<2x32xf32>, vector<32x128xf32>, vector<2x128xf32> -> vector<2x128xf32>
    %125 = arith.addf %123, %124 : vector<2x128xf32>
    %126 = arith.negf %125 : vector<2x128xf32>
    %127 = math.exp %126 : vector<2x128xf32>
    %cst_29 = arith.constant 1.000000e+00 : f32
    %128 = vector.broadcast %cst_29 : f32 to vector<2x128xf32>
    %129 = arith.addf %128, %127 : vector<2x128xf32>
    %130 = arith.divf %128, %129 : vector<2x128xf32>
    %131 = math.tanh %125 : vector<2x128xf32>
    %132 = vector.extract_strided_slice %130 {offsets = [0, 0], sizes = [2, 32], strides = [1, 1]} : vector<2x128xf32> to vector<2x32xf32>
    %133 = vector.extract_strided_slice %130 {offsets = [0, 32], sizes = [2, 32], strides = [1, 1]} : vector<2x128xf32> to vector<2x32xf32>
    %134 = vector.extract_strided_slice %130 {offsets = [0, 96], sizes = [2, 32], strides = [1, 1]} : vector<2x128xf32> to vector<2x32xf32>
    %135 = vector.extract_strided_slice %131 {offsets = [0, 64], sizes = [2, 32], strides = [1, 1]} : vector<2x128xf32> to vector<2x32xf32>
    %136 = arith.mulf %133, %119 : vector<2x32xf32>
    %137 = arith.mulf %132, %135 : vector<2x32xf32>
    %138 = arith.addf %136, %137 : vector<2x32xf32>
    %139 = math.tanh %138 : vector<2x32xf32>
    %140 = arith.mulf %134, %139 : vector<2x32xf32>
    %c2 = arith.constant 2 : index
    %c0_30 = arith.constant 0 : index
    %141 = vector.load %arg12[%c2, %c0_30] : memref<16x32xf32, #tpu.memory_space<vmem>>, vector<2x32xf32>
    tpu.vector_store %arg12[%c2, %c0_30], %140 {strides = array<i32>} : memref<16x32xf32, #tpu.memory_space<vmem>>, vector<2x32xf32>,
    %142 = vector.extract_strided_slice %5 {offsets = [0, 128], sizes = [2, 128], strides = [1, 1]} : vector<16x256xf32> to vector<2x128xf32>
    %cst_31 = arith.constant dense<0.000000e+00> : vector<2x128xf32>
    %143 = tpu.matmul %140, %7, %cst_31 {dimension_numbers = #tpu.dot_dimension_numbers<[1], [0], [0], [1], [0, 0, 1, 1], [], []>} : vector<2x32xf32>, vector<32x128xf32>, vector<2x128xf32> -> vector<2x128xf32>
    %144 = arith.addf %142, %143 : vector<2x128xf32>
    %145 = arith.negf %144 : vector<2x128xf32>
    %146 = math.exp %145 : vector<2x128xf32>
    %cst_32 = arith.constant 1.000000e+00 : f32
    %147 = vector.broadcast %cst_32 : f32 to vector<2x128xf32>
    %148 = arith.addf %147, %146 : vector<2x128xf32>
    %149 = arith.divf %147, %148 : vector<2x128xf32>
    %150 = math.tanh %144 : vector<2x128xf32>
    %151 = vector.extract_strided_slice %149 {offsets = [0, 0], sizes = [2, 32], strides = [1, 1]} : vector<2x128xf32> to vector<2x32xf32>
    %152 = vector.extract_strided_slice %149 {offsets = [0, 32], sizes = [2, 32], strides = [1, 1]} : vector<2x128xf32> to vector<2x32xf32>
    %153 = vector.extract_strided_slice %149 {offsets = [0, 96], sizes = [2, 32], strides = [1, 1]} : vector<2x128xf32> to vector<2x32xf32>
    %154 = vector.extract_strided_slice %150 {offsets = [0, 64], sizes = [2, 32], strides = [1, 1]} : vector<2x128xf32> to vector<2x32xf32>
    %155 = arith.mulf %152, %138 : vector<2x32xf32>
    %156 = arith.mulf %151, %154 : vector<2x32xf32>
    %157 = arith.addf %155, %156 : vector<2x32xf32>
    %158 = math.tanh %157 : vector<2x32xf32>
    %159 = arith.mulf %153, %158 : vector<2x32xf32>
    %c0_33 = arith.constant 0 : index
    %c0_34 = arith.constant 0 : index
    %160 = vector.load %arg12[%c0_33, %c0_34] : memref<16x32xf32, #tpu.memory_space<vmem>>, vector<2x32xf32>
    tpu.vector_store %arg12[%c0_33, %c0_34], %159 {strides = array<i32>} : memref<16x32xf32, #tpu.memory_space<vmem>>, vector<2x32xf32>,
    %c0_35 = arith.constant 0 : index
    %c0_36 = arith.constant 0 : index
    %161 = vector.load %arg12[%c0_35, %c0_36] : memref<16x32xf32, #tpu.memory_space<vmem>>, vector<16x32xf32>
    %c0_37 = arith.constant 0 : index
    %c0_38 = arith.constant 0 : index
    %162 = vector.load %arg6[%c0_37, %c0_38] : memref<32x256xf32, #tpu.memory_space<vmem>>, vector<32x256xf32>
    %cst_39 = arith.constant dense<0.000000e+00> : vector<16x256xf32>
    %163 = tpu.matmul %161, %162, %cst_39 {dimension_numbers = #tpu.dot_dimension_numbers<[1], [0], [0], [1], [0, 0, 1, 1], [], []>} : vector<16x32xf32>, vector<32x256xf32>, vector<16x256xf32> -> vector<16x256xf32>
    %c0_40 = arith.constant 0 : index
    %c0_41 = arith.constant 0 : index
    %164 = vector.load %arg7[%c0_40, %c0_41] : memref<1x256xf32, #tpu.memory_space<vmem>>, vector<1x256xf32>
    %165 = vector.broadcast %164 : vector<1x256xf32> to vector<16x256xf32>
    %166 = arith.addf %163, %165 : vector<16x256xf32>
    %c0_42 = arith.constant 0 : index
    %c0_43 = arith.constant 0 : index
    %167 = vector.load %arg5[%c0_42, %c0_43] : memref<64x128xf32, #tpu.memory_space<vmem>>, vector<64x128xf32>
    %168 = vector.extract_strided_slice %5 {offsets = [0, 0], sizes = [2, 128], strides = [1, 1]} : vector<16x256xf32> to vector<2x128xf32>
    %cst_44 = arith.constant dense<0.000000e+00> : vector<2x128xf32>
    %169 = tpu.matmul %8, %6, %cst_44 {dimension_numbers = #tpu.dot_dimension_numbers<[1], [0], [0], [1], [0, 0, 1, 1], [], []>} : vector<2x32xf32>, vector<32x128xf32>, vector<2x128xf32> -> vector<2x128xf32>
    %170 = arith.addf %168, %169 : vector<2x128xf32>
    %171 = arith.negf %170 : vector<2x128xf32>
    %172 = math.exp %171 : vector<2x128xf32>
    %cst_45 = arith.constant 1.000000e+00 : f32
    %173 = vector.broadcast %cst_45 : f32 to vector<2x128xf32>
    %174 = arith.addf %173, %172 : vector<2x128xf32>
    %175 = arith.divf %173, %174 : vector<2x128xf32>
    %176 = math.tanh %170 : vector<2x128xf32>
    %177 = vector.extract_strided_slice %175 {offsets = [0, 0], sizes = [2, 32], strides = [1, 1]} : vector<2x128xf32> to vector<2x32xf32>
    %178 = vector.extract_strided_slice %175 {offsets = [0, 32], sizes = [2, 32], strides = [1, 1]} : vector<2x128xf32> to vector<2x32xf32>
    %179 = vector.extract_strided_slice %175 {offsets = [0, 96], sizes = [2, 32], strides = [1, 1]} : vector<2x128xf32> to vector<2x32xf32>
    %180 = vector.extract_strided_slice %176 {offsets = [0, 64], sizes = [2, 32], strides = [1, 1]} : vector<2x128xf32> to vector<2x32xf32>
    %181 = arith.mulf %178, %8 : vector<2x32xf32>
    %182 = arith.mulf %177, %180 : vector<2x32xf32>
    %183 = arith.addf %181, %182 : vector<2x32xf32>
    %184 = math.tanh %183 : vector<2x32xf32>
    %185 = arith.mulf %179, %184 : vector<2x32xf32>
    %186 = tpu.concatenate %185, %8 in 1 : vector<2x32xf32>, vector<2x32xf32> -> vector<2x64xf32>
    %cst_46 = arith.constant dense<0.000000e+00> : vector<2x128xf32>
    %187 = tpu.matmul %186, %167, %cst_46 {dimension_numbers = #tpu.dot_dimension_numbers<[1], [0], [0], [1], [0, 0, 1, 1], [], []>} : vector<2x64xf32>, vector<64x128xf32>, vector<2x128xf32> -> vector<2x128xf32>
    %188 = vector.extract_strided_slice %166 {offsets = [0, 0], sizes = [2, 128], strides = [1, 1]} : vector<16x256xf32> to vector<2x128xf32>
    %189 = arith.addf %187, %188 : vector<2x128xf32>
    %190 = arith.negf %189 : vector<2x128xf32>
    %191 = math.exp %190 : vector<2x128xf32>
    %cst_47 = arith.constant 1.000000e+00 : f32
    %192 = vector.broadcast %cst_47 : f32 to vector<2x128xf32>
    %193 = arith.addf %192, %191 : vector<2x128xf32>
    %194 = arith.divf %192, %193 : vector<2x128xf32>
    %195 = math.tanh %189 : vector<2x128xf32>
    %196 = vector.extract_strided_slice %194 {offsets = [0, 0], sizes = [2, 32], strides = [1, 1]} : vector<2x128xf32> to vector<2x32xf32>
    %197 = vector.extract_strided_slice %194 {offsets = [0, 32], sizes = [2, 32], strides = [1, 1]} : vector<2x128xf32> to vector<2x32xf32>
    %198 = vector.extract_strided_slice %194 {offsets = [0, 96], sizes = [2, 32], strides = [1, 1]} : vector<2x128xf32> to vector<2x32xf32>
    %199 = vector.extract_strided_slice %195 {offsets = [0, 64], sizes = [2, 32], strides = [1, 1]} : vector<2x128xf32> to vector<2x32xf32>
    %200 = arith.mulf %197, %8 : vector<2x32xf32>
    %201 = arith.mulf %196, %199 : vector<2x32xf32>
    %202 = arith.addf %200, %201 : vector<2x32xf32>
    %203 = math.tanh %202 : vector<2x32xf32>
    %204 = arith.mulf %198, %203 : vector<2x32xf32>
    %205 = vector.extract_strided_slice %5 {offsets = [2, 0], sizes = [2, 128], strides = [1, 1]} : vector<16x256xf32> to vector<2x128xf32>
    %cst_48 = arith.constant dense<0.000000e+00> : vector<2x128xf32>
    %206 = tpu.matmul %185, %6, %cst_48 {dimension_numbers = #tpu.dot_dimension_numbers<[1], [0], [0], [1], [0, 0, 1, 1], [], []>} : vector<2x32xf32>, vector<32x128xf32>, vector<2x128xf32> -> vector<2x128xf32>
    %207 = arith.addf %205, %206 : vector<2x128xf32>
    %208 = arith.negf %207 : vector<2x128xf32>
    %209 = math.exp %208 : vector<2x128xf32>
    %cst_49 = arith.constant 1.000000e+00 : f32
    %210 = vector.broadcast %cst_49 : f32 to vector<2x128xf32>
    %211 = arith.addf %210, %209 : vector<2x128xf32>
    %212 = arith.divf %210, %211 : vector<2x128xf32>
    %213 = math.tanh %207 : vector<2x128xf32>
    %214 = vector.extract_strided_slice %212 {offsets = [0, 0], sizes = [2, 32], strides = [1, 1]} : vector<2x128xf32> to vector<2x32xf32>
    %215 = vector.extract_strided_slice %212 {offsets = [0, 32], sizes = [2, 32], strides = [1, 1]} : vector<2x128xf32> to vector<2x32xf32>
    %216 = vector.extract_strided_slice %212 {offsets = [0, 96], sizes = [2, 32], strides = [1, 1]} : vector<2x128xf32> to vector<2x32xf32>
    %217 = vector.extract_strided_slice %213 {offsets = [0, 64], sizes = [2, 32], strides = [1, 1]} : vector<2x128xf32> to vector<2x32xf32>
    %218 = arith.mulf %215, %183 : vector<2x32xf32>
    %219 = arith.mulf %214, %217 : vector<2x32xf32>
    %220 = arith.addf %218, %219 : vector<2x32xf32>
    %221 = math.tanh %220 : vector<2x32xf32>
    %222 = arith.mulf %216, %221 : vector<2x32xf32>
    %223 = tpu.concatenate %222, %204 in 1 : vector<2x32xf32>, vector<2x32xf32> -> vector<2x64xf32>
    %cst_50 = arith.constant dense<0.000000e+00> : vector<2x128xf32>
    %224 = tpu.matmul %223, %167, %cst_50 {dimension_numbers = #tpu.dot_dimension_numbers<[1], [0], [0], [1], [0, 0, 1, 1], [], []>} : vector<2x64xf32>, vector<64x128xf32>, vector<2x128xf32> -> vector<2x128xf32>
    %225 = vector.extract_strided_slice %166 {offsets = [2, 0], sizes = [2, 128], strides = [1, 1]} : vector<16x256xf32> to vector<2x128xf32>
    %226 = arith.addf %224, %225 : vector<2x128xf32>
    %227 = arith.negf %226 : vector<2x128xf32>
    %228 = math.exp %227 : vector<2x128xf32>
    %cst_51 = arith.constant 1.000000e+00 : f32
    %229 = vector.broadcast %cst_51 : f32 to vector<2x128xf32>
    %230 = arith.addf %229, %228 : vector<2x128xf32>
    %231 = arith.divf %229, %230 : vector<2x128xf32>
    %232 = math.tanh %226 : vector<2x128xf32>
    %233 = vector.extract_strided_slice %231 {offsets = [0, 0], sizes = [2, 32], strides = [1, 1]} : vector<2x128xf32> to vector<2x32xf32>
    %234 = vector.extract_strided_slice %231 {offsets = [0, 32], sizes = [2, 32], strides = [1, 1]} : vector<2x128xf32> to vector<2x32xf32>
    %235 = vector.extract_strided_slice %231 {offsets = [0, 96], sizes = [2, 32], strides = [1, 1]} : vector<2x128xf32> to vector<2x32xf32>
    %236 = vector.extract_strided_slice %232 {offsets = [0, 64], sizes = [2, 32], strides = [1, 1]} : vector<2x128xf32> to vector<2x32xf32>
    %237 = arith.mulf %234, %202 : vector<2x32xf32>
    %238 = arith.mulf %233, %236 : vector<2x32xf32>
    %239 = arith.addf %237, %238 : vector<2x32xf32>
    %240 = math.tanh %239 : vector<2x32xf32>
    %241 = arith.mulf %235, %240 : vector<2x32xf32>
    %242 = vector.extract_strided_slice %5 {offsets = [4, 0], sizes = [2, 128], strides = [1, 1]} : vector<16x256xf32> to vector<2x128xf32>
    %cst_52 = arith.constant dense<0.000000e+00> : vector<2x128xf32>
    %243 = tpu.matmul %222, %6, %cst_52 {dimension_numbers = #tpu.dot_dimension_numbers<[1], [0], [0], [1], [0, 0, 1, 1], [], []>} : vector<2x32xf32>, vector<32x128xf32>, vector<2x128xf32> -> vector<2x128xf32>
    %244 = arith.addf %242, %243 : vector<2x128xf32>
    %245 = arith.negf %244 : vector<2x128xf32>
    %246 = math.exp %245 : vector<2x128xf32>
    %cst_53 = arith.constant 1.000000e+00 : f32
    %247 = vector.broadcast %cst_53 : f32 to vector<2x128xf32>
    %248 = arith.addf %247, %246 : vector<2x128xf32>
    %249 = arith.divf %247, %248 : vector<2x128xf32>
    %250 = math.tanh %244 : vector<2x128xf32>
    %251 = vector.extract_strided_slice %249 {offsets = [0, 0], sizes = [2, 32], strides = [1, 1]} : vector<2x128xf32> to vector<2x32xf32>
    %252 = vector.extract_strided_slice %249 {offsets = [0, 32], sizes = [2, 32], strides = [1, 1]} : vector<2x128xf32> to vector<2x32xf32>
    %253 = vector.extract_strided_slice %249 {offsets = [0, 96], sizes = [2, 32], strides = [1, 1]} : vector<2x128xf32> to vector<2x32xf32>
    %254 = vector.extract_strided_slice %250 {offsets = [0, 64], sizes = [2, 32], strides = [1, 1]} : vector<2x128xf32> to vector<2x32xf32>
    %255 = arith.mulf %252, %220 : vector<2x32xf32>
    %256 = arith.mulf %251, %254 : vector<2x32xf32>
    %257 = arith.addf %255, %256 : vector<2x32xf32>
    %258 = math.tanh %257 : vector<2x32xf32>
    %259 = arith.mulf %253, %258 : vector<2x32xf32>
    %260 = tpu.concatenate %259, %241 in 1 : vector<2x32xf32>, vector<2x32xf32> -> vector<2x64xf32>
    %cst_54 = arith.constant dense<0.000000e+00> : vector<2x128xf32>
    %261 = tpu.matmul %260, %167, %cst_54 {dimension_numbers = #tpu.dot_dimension_numbers<[1], [0], [0], [1], [0, 0, 1, 1], [], []>} : vector<2x64xf32>, vector<64x128xf32>, vector<2x128xf32> -> vector<2x128xf32>
    %262 = vector.extract_strided_slice %166 {offsets = [4, 0], sizes = [2, 128], strides = [1, 1]} : vector<16x256xf32> to vector<2x128xf32>
    %263 = arith.addf %261, %262 : vector<2x128xf32>
    %264 = arith.negf %263 : vector<2x128xf32>
    %265 = math.exp %264 : vector<2x128xf32>
    %cst_55 = arith.constant 1.000000e+00 : f32
    %266 = vector.broadcast %cst_55 : f32 to vector<2x128xf32>
    %267 = arith.addf %266, %265 : vector<2x128xf32>
    %268 = arith.divf %266, %267 : vector<2x128xf32>
    %269 = math.tanh %263 : vector<2x128xf32>
    %270 = vector.extract_strided_slice %268 {offsets = [0, 0], sizes = [2, 32], strides = [1, 1]} : vector<2x128xf32> to vector<2x32xf32>
    %271 = vector.extract_strided_slice %268 {offsets = [0, 32], sizes = [2, 32], strides = [1, 1]} : vector<2x128xf32> to vector<2x32xf32>
    %272 = vector.extract_strided_slice %268 {offsets = [0, 96], sizes = [2, 32], strides = [1, 1]} : vector<2x128xf32> to vector<2x32xf32>
    %273 = vector.extract_strided_slice %269 {offsets = [0, 64], sizes = [2, 32], strides = [1, 1]} : vector<2x128xf32> to vector<2x32xf32>
    %274 = arith.mulf %271, %239 : vector<2x32xf32>
    %275 = arith.mulf %270, %273 : vector<2x32xf32>
    %276 = arith.addf %274, %275 : vector<2x32xf32>
    %277 = math.tanh %276 : vector<2x32xf32>
    %278 = arith.mulf %272, %277 : vector<2x32xf32>
    %279 = vector.extract_strided_slice %5 {offsets = [6, 0], sizes = [2, 128], strides = [1, 1]} : vector<16x256xf32> to vector<2x128xf32>
    %cst_56 = arith.constant dense<0.000000e+00> : vector<2x128xf32>
    %280 = tpu.matmul %259, %6, %cst_56 {dimension_numbers = #tpu.dot_dimension_numbers<[1], [0], [0], [1], [0, 0, 1, 1], [], []>} : vector<2x32xf32>, vector<32x128xf32>, vector<2x128xf32> -> vector<2x128xf32>
    %281 = arith.addf %279, %280 : vector<2x128xf32>
    %282 = arith.negf %281 : vector<2x128xf32>
    %283 = math.exp %282 : vector<2x128xf32>
    %cst_57 = arith.constant 1.000000e+00 : f32
    %284 = vector.broadcast %cst_57 : f32 to vector<2x128xf32>
    %285 = arith.addf %284, %283 : vector<2x128xf32>
    %286 = arith.divf %284, %285 : vector<2x128xf32>
    %287 = math.tanh %281 : vector<2x128xf32>
    %288 = vector.extract_strided_slice %286 {offsets = [0, 0], sizes = [2, 32], strides = [1, 1]} : vector<2x128xf32> to vector<2x32xf32>
    %289 = vector.extract_strided_slice %286 {offsets = [0, 32], sizes = [2, 32], strides = [1, 1]} : vector<2x128xf32> to vector<2x32xf32>
    %290 = vector.extract_strided_slice %286 {offsets = [0, 96], sizes = [2, 32], strides = [1, 1]} : vector<2x128xf32> to vector<2x32xf32>
    %291 = vector.extract_strided_slice %287 {offsets = [0, 64], sizes = [2, 32], strides = [1, 1]} : vector<2x128xf32> to vector<2x32xf32>
    %292 = arith.mulf %289, %257 : vector<2x32xf32>
    %293 = arith.mulf %288, %291 : vector<2x32xf32>
    %294 = arith.addf %292, %293 : vector<2x32xf32>
    %295 = math.tanh %294 : vector<2x32xf32>
    %296 = arith.mulf %290, %295 : vector<2x32xf32>
    %297 = tpu.concatenate %296, %278 in 1 : vector<2x32xf32>, vector<2x32xf32> -> vector<2x64xf32>
    %cst_58 = arith.constant dense<0.000000e+00> : vector<2x128xf32>
    %298 = tpu.matmul %297, %167, %cst_58 {dimension_numbers = #tpu.dot_dimension_numbers<[1], [0], [0], [1], [0, 0, 1, 1], [], []>} : vector<2x64xf32>, vector<64x128xf32>, vector<2x128xf32> -> vector<2x128xf32>
    %299 = vector.extract_strided_slice %166 {offsets = [6, 0], sizes = [2, 128], strides = [1, 1]} : vector<16x256xf32> to vector<2x128xf32>
    %300 = arith.addf %298, %299 : vector<2x128xf32>
    %301 = arith.negf %300 : vector<2x128xf32>
    %302 = math.exp %301 : vector<2x128xf32>
    %cst_59 = arith.constant 1.000000e+00 : f32
    %303 = vector.broadcast %cst_59 : f32 to vector<2x128xf32>
    %304 = arith.addf %303, %302 : vector<2x128xf32>
    %305 = arith.divf %303, %304 : vector<2x128xf32>
    %306 = math.tanh %300 : vector<2x128xf32>
    %307 = vector.extract_strided_slice %305 {offsets = [0, 0], sizes = [2, 32], strides = [1, 1]} : vector<2x128xf32> to vector<2x32xf32>
    %308 = vector.extract_strided_slice %305 {offsets = [0, 32], sizes = [2, 32], strides = [1, 1]} : vector<2x128xf32> to vector<2x32xf32>
    %309 = vector.extract_strided_slice %305 {offsets = [0, 96], sizes = [2, 32], strides = [1, 1]} : vector<2x128xf32> to vector<2x32xf32>
    %310 = vector.extract_strided_slice %306 {offsets = [0, 64], sizes = [2, 32], strides = [1, 1]} : vector<2x128xf32> to vector<2x32xf32>
    %311 = arith.mulf %308, %276 : vector<2x32xf32>
    %312 = arith.mulf %307, %310 : vector<2x32xf32>
    %313 = arith.addf %311, %312 : vector<2x32xf32>
    %314 = math.tanh %313 : vector<2x32xf32>
    %315 = arith.mulf %309, %314 : vector<2x32xf32>
    %316 = vector.extract_strided_slice %5 {offsets = [8, 0], sizes = [2, 128], strides = [1, 1]} : vector<16x256xf32> to vector<2x128xf32>
    %cst_60 = arith.constant dense<0.000000e+00> : vector<2x128xf32>
    %317 = tpu.matmul %296, %6, %cst_60 {dimension_numbers = #tpu.dot_dimension_numbers<[1], [0], [0], [1], [0, 0, 1, 1], [], []>} : vector<2x32xf32>, vector<32x128xf32>, vector<2x128xf32> -> vector<2x128xf32>
    %318 = arith.addf %316, %317 : vector<2x128xf32>
    %319 = arith.negf %318 : vector<2x128xf32>
    %320 = math.exp %319 : vector<2x128xf32>
    %cst_61 = arith.constant 1.000000e+00 : f32
    %321 = vector.broadcast %cst_61 : f32 to vector<2x128xf32>
    %322 = arith.addf %321, %320 : vector<2x128xf32>
    %323 = arith.divf %321, %322 : vector<2x128xf32>
    %324 = math.tanh %318 : vector<2x128xf32>
    %325 = vector.extract_strided_slice %323 {offsets = [0, 0], sizes = [2, 32], strides = [1, 1]} : vector<2x128xf32> to vector<2x32xf32>
    %326 = vector.extract_strided_slice %323 {offsets = [0, 32], sizes = [2, 32], strides = [1, 1]} : vector<2x128xf32> to vector<2x32xf32>
    %327 = vector.extract_strided_slice %323 {offsets = [0, 96], sizes = [2, 32], strides = [1, 1]} : vector<2x128xf32> to vector<2x32xf32>
    %328 = vector.extract_strided_slice %324 {offsets = [0, 64], sizes = [2, 32], strides = [1, 1]} : vector<2x128xf32> to vector<2x32xf32>
    %329 = arith.mulf %326, %294 : vector<2x32xf32>
    %330 = arith.mulf %325, %328 : vector<2x32xf32>
    %331 = arith.addf %329, %330 : vector<2x32xf32>
    %332 = math.tanh %331 : vector<2x32xf32>
    %333 = arith.mulf %327, %332 : vector<2x32xf32>
    %334 = tpu.concatenate %333, %315 in 1 : vector<2x32xf32>, vector<2x32xf32> -> vector<2x64xf32>
    %cst_62 = arith.constant dense<0.000000e+00> : vector<2x128xf32>
    %335 = tpu.matmul %334, %167, %cst_62 {dimension_numbers = #tpu.dot_dimension_numbers<[1], [0], [0], [1], [0, 0, 1, 1], [], []>} : vector<2x64xf32>, vector<64x128xf32>, vector<2x128xf32> -> vector<2x128xf32>
    %336 = vector.extract_strided_slice %166 {offsets = [8, 0], sizes = [2, 128], strides = [1, 1]} : vector<16x256xf32> to vector<2x128xf32>
    %337 = arith.addf %335, %336 : vector<2x128xf32>
    %338 = arith.negf %337 : vector<2x128xf32>
    %339 = math.exp %338 : vector<2x128xf32>
    %cst_63 = arith.constant 1.000000e+00 : f32
    %340 = vector.broadcast %cst_63 : f32 to vector<2x128xf32>
    %341 = arith.addf %340, %339 : vector<2x128xf32>
    %342 = arith.divf %340, %341 : vector<2x128xf32>
    %343 = math.tanh %337 : vector<2x128xf32>
    %344 = vector.extract_strided_slice %342 {offsets = [0, 0], sizes = [2, 32], strides = [1, 1]} : vector<2x128xf32> to vector<2x32xf32>
    %345 = vector.extract_strided_slice %342 {offsets = [0, 32], sizes = [2, 32], strides = [1, 1]} : vector<2x128xf32> to vector<2x32xf32>
    %346 = vector.extract_strided_slice %342 {offsets = [0, 96], sizes = [2, 32], strides = [1, 1]} : vector<2x128xf32> to vector<2x32xf32>
    %347 = vector.extract_strided_slice %343 {offsets = [0, 64], sizes = [2, 32], strides = [1, 1]} : vector<2x128xf32> to vector<2x32xf32>
    %348 = arith.mulf %345, %313 : vector<2x32xf32>
    %349 = arith.mulf %344, %347 : vector<2x32xf32>
    %350 = arith.addf %348, %349 : vector<2x32xf32>
    %351 = math.tanh %350 : vector<2x32xf32>
    %352 = arith.mulf %346, %351 : vector<2x32xf32>
    %353 = vector.extract_strided_slice %5 {offsets = [10, 0], sizes = [2, 128], strides = [1, 1]} : vector<16x256xf32> to vector<2x128xf32>
    %cst_64 = arith.constant dense<0.000000e+00> : vector<2x128xf32>
    %354 = tpu.matmul %333, %6, %cst_64 {dimension_numbers = #tpu.dot_dimension_numbers<[1], [0], [0], [1], [0, 0, 1, 1], [], []>} : vector<2x32xf32>, vector<32x128xf32>, vector<2x128xf32> -> vector<2x128xf32>
    %355 = arith.addf %353, %354 : vector<2x128xf32>
    %356 = arith.negf %355 : vector<2x128xf32>
    %357 = math.exp %356 : vector<2x128xf32>
    %cst_65 = arith.constant 1.000000e+00 : f32
    %358 = vector.broadcast %cst_65 : f32 to vector<2x128xf32>
    %359 = arith.addf %358, %357 : vector<2x128xf32>
    %360 = arith.divf %358, %359 : vector<2x128xf32>
    %361 = math.tanh %355 : vector<2x128xf32>
    %362 = vector.extract_strided_slice %360 {offsets = [0, 0], sizes = [2, 32], strides = [1, 1]} : vector<2x128xf32> to vector<2x32xf32>
    %363 = vector.extract_strided_slice %360 {offsets = [0, 32], sizes = [2, 32], strides = [1, 1]} : vector<2x128xf32> to vector<2x32xf32>
    %364 = vector.extract_strided_slice %360 {offsets = [0, 96], sizes = [2, 32], strides = [1, 1]} : vector<2x128xf32> to vector<2x32xf32>
    %365 = vector.extract_strided_slice %361 {offsets = [0, 64], sizes = [2, 32], strides = [1, 1]} : vector<2x128xf32> to vector<2x32xf32>
    %366 = arith.mulf %363, %331 : vector<2x32xf32>
    %367 = arith.mulf %362, %365 : vector<2x32xf32>
    %368 = arith.addf %366, %367 : vector<2x32xf32>
    %369 = math.tanh %368 : vector<2x32xf32>
    %370 = arith.mulf %364, %369 : vector<2x32xf32>
    %371 = tpu.concatenate %370, %352 in 1 : vector<2x32xf32>, vector<2x32xf32> -> vector<2x64xf32>
    %cst_66 = arith.constant dense<0.000000e+00> : vector<2x128xf32>
    %372 = tpu.matmul %371, %167, %cst_66 {dimension_numbers = #tpu.dot_dimension_numbers<[1], [0], [0], [1], [0, 0, 1, 1], [], []>} : vector<2x64xf32>, vector<64x128xf32>, vector<2x128xf32> -> vector<2x128xf32>
    %373 = vector.extract_strided_slice %166 {offsets = [10, 0], sizes = [2, 128], strides = [1, 1]} : vector<16x256xf32> to vector<2x128xf32>
    %374 = arith.addf %372, %373 : vector<2x128xf32>
    %375 = arith.negf %374 : vector<2x128xf32>
    %376 = math.exp %375 : vector<2x128xf32>
    %cst_67 = arith.constant 1.000000e+00 : f32
    %377 = vector.broadcast %cst_67 : f32 to vector<2x128xf32>
    %378 = arith.addf %377, %376 : vector<2x128xf32>
    %379 = arith.divf %377, %378 : vector<2x128xf32>
    %380 = math.tanh %374 : vector<2x128xf32>
    %381 = vector.extract_strided_slice %379 {offsets = [0, 0], sizes = [2, 32], strides = [1, 1]} : vector<2x128xf32> to vector<2x32xf32>
    %382 = vector.extract_strided_slice %379 {offsets = [0, 32], sizes = [2, 32], strides = [1, 1]} : vector<2x128xf32> to vector<2x32xf32>
    %383 = vector.extract_strided_slice %379 {offsets = [0, 96], sizes = [2, 32], strides = [1, 1]} : vector<2x128xf32> to vector<2x32xf32>
    %384 = vector.extract_strided_slice %380 {offsets = [0, 64], sizes = [2, 32], strides = [1, 1]} : vector<2x128xf32> to vector<2x32xf32>
    %385 = arith.mulf %382, %350 : vector<2x32xf32>
    %386 = arith.mulf %381, %384 : vector<2x32xf32>
    %387 = arith.addf %385, %386 : vector<2x32xf32>
    %388 = math.tanh %387 : vector<2x32xf32>
    %389 = arith.mulf %383, %388 : vector<2x32xf32>
    %390 = vector.extract_strided_slice %5 {offsets = [12, 0], sizes = [2, 128], strides = [1, 1]} : vector<16x256xf32> to vector<2x128xf32>
    %cst_68 = arith.constant dense<0.000000e+00> : vector<2x128xf32>
    %391 = tpu.matmul %370, %6, %cst_68 {dimension_numbers = #tpu.dot_dimension_numbers<[1], [0], [0], [1], [0, 0, 1, 1], [], []>} : vector<2x32xf32>, vector<32x128xf32>, vector<2x128xf32> -> vector<2x128xf32>
    %392 = arith.addf %390, %391 : vector<2x128xf32>
    %393 = arith.negf %392 : vector<2x128xf32>
    %394 = math.exp %393 : vector<2x128xf32>
    %cst_69 = arith.constant 1.000000e+00 : f32
    %395 = vector.broadcast %cst_69 : f32 to vector<2x128xf32>
    %396 = arith.addf %395, %394 : vector<2x128xf32>
    %397 = arith.divf %395, %396 : vector<2x128xf32>
    %398 = math.tanh %392 : vector<2x128xf32>
    %399 = vector.extract_strided_slice %397 {offsets = [0, 0], sizes = [2, 32], strides = [1, 1]} : vector<2x128xf32> to vector<2x32xf32>
    %400 = vector.extract_strided_slice %397 {offsets = [0, 32], sizes = [2, 32], strides = [1, 1]} : vector<2x128xf32> to vector<2x32xf32>
    %401 = vector.extract_strided_slice %397 {offsets = [0, 96], sizes = [2, 32], strides = [1, 1]} : vector<2x128xf32> to vector<2x32xf32>
    %402 = vector.extract_strided_slice %398 {offsets = [0, 64], sizes = [2, 32], strides = [1, 1]} : vector<2x128xf32> to vector<2x32xf32>
    %403 = arith.mulf %400, %368 : vector<2x32xf32>
    %404 = arith.mulf %399, %402 : vector<2x32xf32>
    %405 = arith.addf %403, %404 : vector<2x32xf32>
    %406 = math.tanh %405 : vector<2x32xf32>
    %407 = arith.mulf %401, %406 : vector<2x32xf32>
    %408 = tpu.concatenate %407, %389 in 1 : vector<2x32xf32>, vector<2x32xf32> -> vector<2x64xf32>
    %cst_70 = arith.constant dense<0.000000e+00> : vector<2x128xf32>
    %409 = tpu.matmul %408, %167, %cst_70 {dimension_numbers = #tpu.dot_dimension_numbers<[1], [0], [0], [1], [0, 0, 1, 1], [], []>} : vector<2x64xf32>, vector<64x128xf32>, vector<2x128xf32> -> vector<2x128xf32>
    %410 = vector.extract_strided_slice %166 {offsets = [12, 0], sizes = [2, 128], strides = [1, 1]} : vector<16x256xf32> to vector<2x128xf32>
    %411 = arith.addf %409, %410 : vector<2x128xf32>
    %412 = arith.negf %411 : vector<2x128xf32>
    %413 = math.exp %412 : vector<2x128xf32>
    %cst_71 = arith.constant 1.000000e+00 : f32
    %414 = vector.broadcast %cst_71 : f32 to vector<2x128xf32>
    %415 = arith.addf %414, %413 : vector<2x128xf32>
    %416 = arith.divf %414, %415 : vector<2x128xf32>
    %417 = math.tanh %411 : vector<2x128xf32>
    %418 = vector.extract_strided_slice %416 {offsets = [0, 0], sizes = [2, 32], strides = [1, 1]} : vector<2x128xf32> to vector<2x32xf32>
    %419 = vector.extract_strided_slice %416 {offsets = [0, 32], sizes = [2, 32], strides = [1, 1]} : vector<2x128xf32> to vector<2x32xf32>
    %420 = vector.extract_strided_slice %416 {offsets = [0, 96], sizes = [2, 32], strides = [1, 1]} : vector<2x128xf32> to vector<2x32xf32>
    %421 = vector.extract_strided_slice %417 {offsets = [0, 64], sizes = [2, 32], strides = [1, 1]} : vector<2x128xf32> to vector<2x32xf32>
    %422 = arith.mulf %419, %387 : vector<2x32xf32>
    %423 = arith.mulf %418, %421 : vector<2x32xf32>
    %424 = arith.addf %422, %423 : vector<2x32xf32>
    %425 = math.tanh %424 : vector<2x32xf32>
    %426 = arith.mulf %420, %425 : vector<2x32xf32>
    %427 = vector.extract_strided_slice %5 {offsets = [14, 0], sizes = [2, 128], strides = [1, 1]} : vector<16x256xf32> to vector<2x128xf32>
    %cst_72 = arith.constant dense<0.000000e+00> : vector<2x128xf32>
    %428 = tpu.matmul %407, %6, %cst_72 {dimension_numbers = #tpu.dot_dimension_numbers<[1], [0], [0], [1], [0, 0, 1, 1], [], []>} : vector<2x32xf32>, vector<32x128xf32>, vector<2x128xf32> -> vector<2x128xf32>
    %429 = arith.addf %427, %428 : vector<2x128xf32>
    %430 = arith.negf %429 : vector<2x128xf32>
    %431 = math.exp %430 : vector<2x128xf32>
    %cst_73 = arith.constant 1.000000e+00 : f32
    %432 = vector.broadcast %cst_73 : f32 to vector<2x128xf32>
    %433 = arith.addf %432, %431 : vector<2x128xf32>
    %434 = arith.divf %432, %433 : vector<2x128xf32>
    %435 = math.tanh %429 : vector<2x128xf32>
    %436 = vector.extract_strided_slice %434 {offsets = [0, 0], sizes = [2, 32], strides = [1, 1]} : vector<2x128xf32> to vector<2x32xf32>
    %437 = vector.extract_strided_slice %434 {offsets = [0, 32], sizes = [2, 32], strides = [1, 1]} : vector<2x128xf32> to vector<2x32xf32>
    %438 = vector.extract_strided_slice %434 {offsets = [0, 96], sizes = [2, 32], strides = [1, 1]} : vector<2x128xf32> to vector<2x32xf32>
    %439 = vector.extract_strided_slice %435 {offsets = [0, 64], sizes = [2, 32], strides = [1, 1]} : vector<2x128xf32> to vector<2x32xf32>
    %440 = arith.mulf %437, %405 : vector<2x32xf32>
    %441 = arith.mulf %436, %439 : vector<2x32xf32>
    %442 = arith.addf %440, %441 : vector<2x32xf32>
    %443 = math.tanh %442 : vector<2x32xf32>
    %444 = arith.mulf %438, %443 : vector<2x32xf32>
    %445 = tpu.concatenate %444, %426 in 1 : vector<2x32xf32>, vector<2x32xf32> -> vector<2x64xf32>
    %cst_74 = arith.constant dense<0.000000e+00> : vector<2x128xf32>
    %446 = tpu.matmul %445, %167, %cst_74 {dimension_numbers = #tpu.dot_dimension_numbers<[1], [0], [0], [1], [0, 0, 1, 1], [], []>} : vector<2x64xf32>, vector<64x128xf32>, vector<2x128xf32> -> vector<2x128xf32>
    %447 = vector.extract_strided_slice %166 {offsets = [14, 0], sizes = [2, 128], strides = [1, 1]} : vector<16x256xf32> to vector<2x128xf32>
    %448 = arith.addf %446, %447 : vector<2x128xf32>
    %449 = arith.negf %448 : vector<2x128xf32>
    %450 = math.exp %449 : vector<2x128xf32>
    %cst_75 = arith.constant 1.000000e+00 : f32
    %451 = vector.broadcast %cst_75 : f32 to vector<2x128xf32>
    %452 = arith.addf %451, %450 : vector<2x128xf32>
    %453 = arith.divf %451, %452 : vector<2x128xf32>
    %454 = math.tanh %448 : vector<2x128xf32>
    %455 = vector.extract_strided_slice %453 {offsets = [0, 0], sizes = [2, 32], strides = [1, 1]} : vector<2x128xf32> to vector<2x32xf32>
    %456 = vector.extract_strided_slice %453 {offsets = [0, 32], sizes = [2, 32], strides = [1, 1]} : vector<2x128xf32> to vector<2x32xf32>
    %457 = vector.extract_strided_slice %453 {offsets = [0, 96], sizes = [2, 32], strides = [1, 1]} : vector<2x128xf32> to vector<2x32xf32>
    %458 = vector.extract_strided_slice %454 {offsets = [0, 64], sizes = [2, 32], strides = [1, 1]} : vector<2x128xf32> to vector<2x32xf32>
    %459 = arith.mulf %456, %424 : vector<2x32xf32>
    %460 = arith.mulf %455, %458 : vector<2x32xf32>
    %461 = arith.addf %459, %460 : vector<2x32xf32>
    %462 = math.tanh %461 : vector<2x32xf32>
    %463 = arith.mulf %457, %462 : vector<2x32xf32>
    %c0_76 = arith.constant 0 : index
    %c0_77 = arith.constant 0 : index
    %464 = vector.load %arg8[%c0_76, %c0_77] : memref<32x128xf32, #tpu.memory_space<vmem>>, vector<32x128xf32>
    %cst_78 = arith.constant dense<0.000000e+00> : vector<2x128xf32>
    %465 = tpu.matmul %444, %464, %cst_78 {dimension_numbers = #tpu.dot_dimension_numbers<[1], [0], [0], [1], [0, 0, 1, 1], [], []>} : vector<2x32xf32>, vector<32x128xf32>, vector<2x128xf32> -> vector<2x128xf32>
    %466 = vector.extract_strided_slice %166 {offsets = [14, 128], sizes = [2, 128], strides = [1, 1]} : vector<16x256xf32> to vector<2x128xf32>
    %467 = arith.addf %465, %466 : vector<2x128xf32>
    %468 = arith.negf %467 : vector<2x128xf32>
    %469 = math.exp %468 : vector<2x128xf32>
    %cst_79 = arith.constant 1.000000e+00 : f32
    %470 = vector.broadcast %cst_79 : f32 to vector<2x128xf32>
    %471 = arith.addf %470, %469 : vector<2x128xf32>
    %472 = arith.divf %470, %471 : vector<2x128xf32>
    %473 = math.tanh %467 : vector<2x128xf32>
    %474 = vector.extract_strided_slice %472 {offsets = [0, 0], sizes = [2, 32], strides = [1, 1]} : vector<2x128xf32> to vector<2x32xf32>
    %475 = vector.extract_strided_slice %473 {offsets = [0, 64], sizes = [2, 32], strides = [1, 1]} : vector<2x128xf32> to vector<2x32xf32>
    %476 = arith.mulf %474, %475 : vector<2x32xf32>
    %477 = vector.extract_strided_slice %472 {offsets = [0, 96], sizes = [2, 32], strides = [1, 1]} : vector<2x128xf32> to vector<2x32xf32>
    %478 = math.tanh %476 : vector<2x32xf32>
    %479 = arith.mulf %477, %478 : vector<2x32xf32>
    %480 = tpu.concatenate %463, %479 in 1 : vector<2x32xf32>, vector<2x32xf32> -> vector<2x64xf32>
    %c0_80 = arith.constant 0 : index
    %c0_81 = arith.constant 0 : index
    %481 = vector.load %arg9[%c0_80, %c0_81] : memref<64x9xf32, #tpu.memory_space<vmem>>, vector<64x9xf32>
    %cst_82 = arith.constant dense<0.000000e+00> : vector<2x9xf32>
    %482 = tpu.matmul %480, %481, %cst_82 {dimension_numbers = #tpu.dot_dimension_numbers<[1], [0], [0], [1], [0, 0, 1, 1], [], []>} : vector<2x64xf32>, vector<64x9xf32>, vector<2x9xf32> -> vector<2x9xf32>
    %c0_83 = arith.constant 0 : index
    %c0_84 = arith.constant 0 : index
    %483 = vector.load %arg10[%c0_83, %c0_84] : memref<1x9xf32, #tpu.memory_space<vmem>>, vector<1x9xf32>
    %484 = vector.broadcast %483 : vector<1x9xf32> to vector<2x9xf32>
    %485 = arith.addf %482, %484 : vector<2x9xf32>
    %c0_85 = arith.constant 0 : index
    %c0_86 = arith.constant 0 : index
    %486 = vector.load %arg11[%c0_85, %c0_86] : memref<2x9xf32, #tpu.memory_space<vmem>>, vector<2x9xf32>
    tpu.vector_store %arg11[%c0_85, %c0_86], %485 {strides = array<i32>} : memref<2x9xf32, #tpu.memory_space<vmem>>, vector<2x9xf32>,
    return
  }
}

</mosaic_0001>

<bundles_post_ra>
// kernel: birnn_forward.1
= control target key start
LH: loop header
LB: loop body
LE: loop exit
PB: predicated region body
PF: predicated region fallthrough
CT: control target
= control target key end

     0   :  { %16 = vsyncpa [#allocation4], 0  ;;  %s4971_s0 = inlined_call_operand.vmem [shape: f32[16,2], index: 0, kind: input, shape index: {}]   ;;  %s4972_s1 = inlined_call_operand.vmem [shape: f32[2,256], index: 1, kind: input, shape index: {}]   ;;  %s4973_s2 = inlined_call_operand.vmem [shape: f32[1,256], index: 2, kind: input, shape index: {}]   ;;  %s4974_s3 = inlined_call_operand.vmem [shape: f32[32,128], index: 3, kind: input, shape index: {}]   ;;  %s4975_s4 = inlined_call_operand.vmem [shape: f32[32,128], index: 4, kind: input, shape index: {}]   ;;  %s4976_s5 = inlined_call_operand.vmem [shape: f32[64,128], index: 5, kind: input, shape index: {}]   ;;  %s4977_s6 = inlined_call_operand.hbm [shape: f32[32,256], index: 6, kind: input, shape index: {}]   ;;  %s4978_s7 = inlined_call_operand.hbm [shape: f32[1,256], index: 7, kind: input, shape index: {}]   ;;  %s4979_s8 = inlined_call_operand.hbm [shape: f32[32,128], index: 8, kind: input, shape index: {}]   ;;  %s4980_s9 = inlined_call_operand.vmem [shape: f32[64,9], index: 9, kind: input, shape index: {}]   ;;  %s4981_s10 = inlined_call_operand.hbm [shape: f32[1,9], index: 10, kind: input, shape index: {}]   ;;  %s4982_s11 = inlined_call_operand.hbm [shape: f32[2,9], index: 11, kind: output, shape index: {}]  }
   0x1   :  { %17 = vsyncpa [#allocation7], 0 }
   0x2   :  { %18 = vsyncpa [#allocation10], 0 }
   0x3   :  { %19 = vsyncpa [#allocation5], 0  ;;  %s4250_s17 = smov [#allocation6]   ;;  %s4251_s19 = smov [#allocation3]  }
   0x4   :  { %s50_s18 = sshll.u32 %s4250_s17, 4  ;;  %s37_s20 = sshll.u32 %s4251_s19, 4  ;;  %s51_s18 = int_to_ptr.vmem [resolvable:$true] %s50_s18  ;;  %s4325_s20 = int_to_ptr.vmem [resolvable:$true] %s37_s20 }
   0x5   :  { %s4132_s23 = scalar_lea.hbm %s4978_s7, 32 }
   0x6   :  { %p4133_p0 = scmp.ne.s32.totalorder %s4978_s7, %s4132_s23  ;;  %p4136_p1 = scmp.lt.u32.totalorder %s4132_s23, %s4978_s7 }
   0x8   :  { %p4138_p2 = pnand %p4136_p1, %p4133_p0 }
   0xa   :  { %4141 = shalt.err (!%p4138_p2)
}
   0xb   :  { %s4142_s28 = scalar_lea.vmem %s51_s18, 32  ;;  %p4147_p4 = scmp.lt.s32.totalorder %s51_s18, %s51_s18 }
   0xc   :  { %p4143_p3 = scmp.ne.s32.totalorder %s51_s18, %s4142_s28  ;;  %p4148_p5 = scmp.lt.s32.totalorder %s4142_s28, %s4142_s28 }
   0xe   :  { %p4149_p6 = por %p4148_p5, %p4147_p4 }
  0x10   :  { %p4150_p7 = pnand %p4149_p6, %p4143_p3 }
  0x12   :  { %4153 = shalt.err (!%p4150_p7)
}
  0x13   :  { %53 = dma.hbm_to_vmem [thread:$0]  %s4978_s7, 32, %s51_s18, [#allocation7]  }
  0x14   :  { %s4154_s14 = scalar_lea.hbm %s4977_s6, 1024 }
  0x15   :  { %p4155_p8 = scmp.ne.s32.totalorder %s4977_s6, %s4154_s14  ;;  %p4158_p9 = scmp.lt.u32.totalorder %s4154_s14, %s4977_s6 }
  0x17   :  { %p4160_p10 = pnand %p4158_p9, %p4155_p8 }
  0x19   :  { %4163 = shalt.err (!%p4160_p10)
}
  0x1a   :  { %s4164_s21 = scalar_lea.vmem %s4325_s20, 1024  ;;  %p4169_p12 = scmp.lt.s32.totalorder %s4325_s20, %s4325_s20 }
  0x1b   :  { %p4165_p11 = scmp.ne.s32.totalorder %s4325_s20, %s4164_s21  ;;  %p4170_p13 = scmp.lt.s32.totalorder %s4164_s21, %s4164_s21 }
  0x1d   :  { %p4171_p0 = por %p4170_p13, %p4169_p12 }
  0x1f   :  { %p4172_p1 = pnand %p4171_p0, %p4165_p11 }
  0x21   :  { %4175 = shalt.err (!%p4172_p1)
}
  0x22   :  { %s4252_s7 = smov 256   ;;  %s4253_s18 = smov 16  }
  0x23   :  { %43 = dma.hbm_to_vmem [thread:$0]  %s4977_s6, 1024, %s4325_s20, [#allocation4], %s4252_s7, %s4252_s7, %s4253_s18  }
  0x24   :  { %s4254_s24 = smov [#allocation8]   ;;  %s4176_s28 = scalar_lea.hbm %s4979_s8, 512 }
  0x25   :  { %s59_s25 = sshll.u32 %s4254_s24, 4  ;;  %p4177_p2 = scmp.ne.s32.totalorder %s4979_s8, %s4176_s28  ;;  %s60_s25 = int_to_ptr.vmem [resolvable:$true] %s59_s25 }
  0x26   :  { %p4180_p3 = scmp.lt.u32.totalorder %s4176_s28, %s4979_s8 }
  0x28   :  { %p4182_p4 = pnand %p4180_p3, %p4177_p2 }
  0x2a   :  { %4185 = shalt.err (!%p4182_p4)
}
  0x2b   :  { %s4186_s14 = scalar_lea.vmem %s60_s25, 512  ;;  %p4191_p6 = scmp.lt.s32.totalorder %s60_s25, %s60_s25 }
  0x2c   :  { %p4187_p5 = scmp.ne.s32.totalorder %s60_s25, %s4186_s14  ;;  %p4192_p7 = scmp.lt.s32.totalorder %s4186_s14, %s4186_s14 }
  0x2e   :  { %p4193_p8 = por %p4192_p7, %p4191_p6 }
  0x30   :  { %p4194_p9 = pnand %p4193_p8, %p4187_p5 }
  0x32   :  { %4197 = shalt.err (!%p4194_p9)
}
  0x33   :  { %s4255_s6 = smov 128   ;;  %s4256_s20 = smov 8  }
  0x34   :  { %65 = dma.hbm_to_vmem [thread:$0]  %s4979_s8, 512, %s60_s25, [#allocation7], %s4255_s6, %s4255_s6, %s4256_s20  }
  0x35   :  { %s4257_s17 = smov [#allocation9]   ;;  %s4198_s18 = scalar_lea.hbm %s4981_s10, 16 }
  0x36   :  { %s74_s19 = sshll.u32 %s4257_s17, 4  ;;  %p4199_p10 = scmp.ne.s32.totalorder %s4981_s10, %s4198_s18  ;;  %s75_s19 = int_to_ptr.vmem [resolvable:$true] %s74_s19 }
  0x37   :  { %p4202_p11 = scmp.lt.u32.totalorder %s4198_s18, %s4981_s10 }
  0x39   :  { %p4204_p12 = pnand %p4202_p11, %p4199_p10 }
  0x3b   :  { %4207 = shalt.err (!%p4204_p12)
}
  0x3c   :  { %s4208_s27 = scalar_lea.vmem %s75_s19, 16  ;;  %s4212_s8 = scalar_lea.vmem %s75_s19, 32 }
  0x3d   :  { %p4209_p13 = scmp.ne.s32.totalorder %s75_s19, %s4208_s27  ;;  %p4213_p0 = scmp.lt.s32.totalorder %s75_s19, %s75_s19 }
  0x3e   :  { %p4214_p1 = scmp.lt.s32.totalorder %s4212_s8, %s4208_s27 }
  0x40   :  { %p4215_p2 = por %p4214_p1, %p4213_p0 }
  0x42   :  { %p4216_p3 = pnand %p4215_p2, %p4209_p13 }
  0x44   :  { %4219 = shalt.err (!%p4216_p3)
}
  0x45   :  { %77 = dma.hbm_to_vmem [thread:$0]  %s4981_s10, 16, %s75_s19, [#allocation10]  }
  0x46   :  { %4242 = dma.done.wait [#allocation4], 1024  }
  0x47   :  { %4243 = vsyncadd [#allocation4], 4294966272 }
  0x48   :  { %4244 = dma.done.wait [#allocation7], 544  }
  0x49   :  { %4245 = vsyncadd [#allocation7], 4294966752 }
  0x4a   :  { %4246 = dma.done.wait [#allocation10], 16  }
  0x4b   :  { %4247 = vsyncadd [#allocation10], 4294967280  ;;  %v4258_v0 = vmov 0.0   ;;  %v4259_v1 = vmov 0.0|0.0   ;;  %vm4260_vm0 = vmmov 0   ;;  %vm121_vm1 = vcmask 1041408  }
  0x4c   :  { %190 = vmatprep.mubr.f32.mxu0 %v4258_v0  ;;  %3710 = vmatprep.subr.bf16.mxu1 %v4259_v1  ;;  %v3117_v2 = vld.sshfl [vmem:[%s4972_s1] sm:$0x33 pattern:$0x76325410]  ;;  %v208_v5 = vld [vmem:[%s4975_s4 + $0x8] sm:$0xff]  ;;  %vm114_vm2 = vcmask 15360   ;;  %v95_v12 = vlaneseq }
  0x4d   :  { %3370 = vmatprep.mubr.msk.f32.mxu1 %vm4260_vm0, %v4258_v0  ;;  %v207_v3 = vld [vmem:[%s4975_s4] sm:$0xff]  ;;  %v113_v4 = vcombine.high %v3117_v2, %v3117_v2  ;;  %v209_v8 = vld [vmem:[%s4975_s4 + $0x10] sm:$0xff]  ;;  %v210_v9 = vld [vmem:[%s4975_s4 + $0x18] sm:$0xff]  ;;  %s4262_s7 = smov 32   ;;  %vm211_vm3 = vcmask 261120   ;;  %vm650_vm4 = vcmask 254976  }
  0x4e   :  { %v90_v6 = vld [vmem:[%s4971_s0] sm:$0xff]  ;;  %v4396_v7 = vpack.c.bf16 %v208_v5, %v207_v3  ;;  %v91_v10 = vld [vmem:[%s4971_s0 + $0x8] sm:$0xff]  ;;  %v4412_v11 = vpack.c.bf16 %v210_v9, %v209_v8  ;;  %v4430_v13 = vshrl.u32 %v95_v12, 7  ;;  %vm317_vm5 = vcmask 261126  }
  0x4f   :  { %3118 = vmatprep.subr.msk.mxu0 %vm121_vm1, %v113_v4  ;;  %v93_v15 = vld [vmem:[%s4973_s2] sm:$0x3]  ;;  %s4261_s2 = smov 64   ;;  %vm541_vm6 = vcmask 257026   ;;  %vm429_vm7 = vcmask 259076   ;;  %vm1302_vm8 = vcmask 523264  }
  0x50   :  { %3119 = vmatpush1.msk.msra.mxu0 %vm121_vm1, %v3117_v2  ;;  %3712 = vmatpush3.bf16.msra.mxu1 %v4396_v7  ;;  %v101_v14 = vsub.s32 1, %v4430_v13  ;;  %v97_v17 = vsub.s32 0, %v4430_v13  ;;  %vm3098_vm9 = vcmask 66560  }
  0x51   :  { %3120 = vmatmul.mubr.msk.f32.vlgmr.msra.gmra.mrb[0].mxu0 %vm114_vm2, %v90_v6  ;;  %3698 = vmatprep.subr.bf16.mxu0 %v4259_v1 }
  0x52   :  { %3700 = vmatpush3.bf16.msra.mxu0 %v4396_v7  ;;  %196 = vmatprep.mubr.f32.mxu0 %v4258_v0  ;;  %v102_v16 = vrot.slane %v93_v15, %v101_v14  ;;  %v4445_v21 = vrot.slane %v93_v15, %v97_v17 }
  0x53   :  { %3701 = vmatprep.subr.bf16.mxu0 %v4259_v1  ;;  %3713 = vmatprep.subr.bf16.mxu1 %v4259_v1 }
  0x54   :  { %3715 = vmatpush3.bf16.msra.mxu1 %v4412_v11 }
  0x55   :  { %3121 = vmatmul.mubr.msk.f32.gmra.mrb[2].mxu0 %vm114_vm2, %v91_v10  ;;  %3722 = vmatprep.subr.bf16.mxu1 %v4259_v1 }
  0x56   :  { %3703 = vmatpush3.bf16.msra.mxu0 %v4412_v11  ;;  %3348 = vmatprep.mubr.msk.f32.mxu0 %vm4260_vm0, %v4258_v0 }
  0x57   :  { %3704 = vmatprep.subr.bf16.mxu0 %v4259_v1 }
  0x59   :  { %3349 = vmatmul.mubr.f32.vlgmr.msra.gmra.mrb[4].mxu0 %v4258_v0 }
  0x5a   :  { %3706 = vmatpush3.bf16.msra.mxu0 %v4396_v7  ;;  %3359 = vmatprep.mubr.msk.f32.mxu0 %vm4260_vm0, %v4258_v0 }
  0x5b   :  { %3707 = vmatprep.subr.bf16.mxu0 %v4259_v1 }
  0x5e   :  { %3709 = vmatpush3.bf16.msra.mxu0 %v4412_v11 }
  0x5f   :  { %3716 = vmatprep.subr.bf16.mxu0 %v4259_v1 }
 0x124   :  { %v4439_v18 = vpop.f32.mrb[0].mxu0 }
 0x125   :  { %v194_v19 = vpop.f32.mrb[1].mxu0 }
 0x126   :  { %v4441_v20 = vadd.f32 %v194_v19, %v102_v16 }
 0x128   :  { %v198_v22 = vpop.f32.mrb[2].mxu0 }
 0x129   :  { %v4448_v23 = vadd.f32 %v198_v22, %v4445_v21  ;;  %v200_v24 = vpop.f32.mrb[3].mxu0 }
 0x12a   :  { %v4450_v26 = vadd.f32 %v200_v24, %v102_v16 }
 0x12c   :  { %v281_v25 = vpop.f32.mrb[4].mxu0 }
 0x12d   :  { %v286_v27 = vrot.slane %v281_v25, 2  ;;  %v3350_v28 = vpop.f32.mrb[5].mxu0 }
 0x12f   :  { %v288_v29 = vadd.f32 %v286_v27, %v4450_v26 }
 0x131   :  { %3931 = vtanh.f32 %v288_v29  ;;  %v3122_v31 = vmul.f32 -1.442695, %v288_v29 }
 0x133   :  { %3933 = vpow2.f32 %v3122_v31 }
 0x13b   :  { %v3932_v30 = vpop.eup %3931 }
 0x13c   :  { %298 = vrot.lane.b32.xlu0 %v3932_v30, %s4261_s2 }
 0x13d   :  { %v3934_v32 = vpop.eup %3933 }
 0x13e   :  { %v292_v33 = vadd.f32 1.0, %v3934_v32 }
 0x140   :  { %3935 = vrcp.f32 %v292_v33 }
 0x14a   :  { %v3936_v34 = vpop.eup %3935 }
 0x14b   :  { %v296_v37 = vmul.f32 0.0, %v3936_v34 }
 0x1ae   :  { %v299_v35 = vpop.permute.xlu0 %298 }
 0x1af   :  { %v301_v36 = vmul.f32 %v3936_v34, %v299_v35 }
 0x1b1   :  { %303 = vrot.lane.b32.xlu0 %v301_v36, %s4262_s7 }
 0x223   :  { %v304_v38 = vpop.permute.xlu0 %303 }
 0x224   :  { %v306_v39 = vadd.f32 %v304_v38, %v296_v37 }
 0x226   :  { %3937 = vtanh.f32 %v306_v39  ;;  %v406_v56 = vrot.slane %v306_v39, 2 }
 0x230   :  { %v3938_v40 = vpop.eup %3937 }
 0x231   :  { %309 = vrot.lane.b32.xlu1 %v3938_v40, %s4261_s2 }
 0x2a3   :  { %v310_v41 = vpop.permute.xlu1 %309 }
 0x2a4   :  { %v4456_v42 = vmul.f32 %v3936_v34, %v310_v41 }
 0x2a6   :  { %v319_v43 = vrot.slane %v4456_v42, 6 }
 0x2a8   :  { %320 = vrot.lane.b32.xlu1 %v319_v43, %s4262_s7 }
 0x31a   :  { %v321_v44 = vpop.permute.xlu1 %320 }
 0x31b   :  { %3360 = vmatmul.mubr.msk.f32.vlgmr.msra.gmra.mrb[6].mxu0 %vm211_vm3, %v321_v44 }
 0x31c   :  { %3718 = vmatpush3.bf16.msra.mxu0 %v4396_v7  ;;  %3381 = vmatprep.mubr.msk.f32.mxu0 %vm4260_vm0, %v4258_v0 }
 0x31d   :  { %3719 = vmatprep.subr.bf16.mxu0 %v4259_v1 }
 0x320   :  { %3721 = vmatpush3.bf16.msra.mxu0 %v4412_v11 }
 0x321   :  { %3728 = vmatprep.subr.bf16.mxu0 %v4259_v1 }
 0x3ee   :  { %v390_v45 = vpop.f32.mrb[6].mxu0 }
 0x3ef   :  { %v395_v46 = vrot.slane %v390_v45, 4  ;;  %v3361_v47 = vpop.f32.mrb[7].mxu0 }
 0x3f1   :  { %v397_v48 = vadd.f32 %v395_v46, %v4450_v26 }
 0x3f3   :  { %3939 = vtanh.f32 %v397_v48  ;;  %v3124_v50 = vmul.f32 -1.442695, %v397_v48 }
 0x3f5   :  { %3941 = vpow2.f32 %v3124_v50 }
 0x3fd   :  { %v3940_v49 = vpop.eup %3939 }
 0x3fe   :  { %410 = vrot.lane.b32.xlu0 %v3940_v49, %s4261_s2 }
 0x3ff   :  { %v3942_v51 = vpop.eup %3941 }
 0x400   :  { %v401_v52 = vadd.f32 1.0, %v3942_v51 }
 0x402   :  { %3943 = vrcp.f32 %v401_v52 }
 0x40c   :  { %v3944_v53 = vpop.eup %3943 }
 0x40d   :  { %v408_v57 = vmul.f32 %v3944_v53, %v406_v56 }
 0x470   :  { %v411_v54 = vpop.permute.xlu0 %410 }
 0x471   :  { %v413_v55 = vmul.f32 %v3944_v53, %v411_v54 }
 0x473   :  { %415 = vrot.lane.b32.xlu1 %v413_v55, %s4262_s7 }
 0x4e5   :  { %v416_v58 = vpop.permute.xlu1 %415 }
 0x4e6   :  { %v418_v59 = vadd.f32 %v416_v58, %v408_v57 }
 0x4e8   :  { %3945 = vtanh.f32 %v418_v59  ;;  %v518_v22 = vrot.slane %v418_v59, 2 }
 0x4f2   :  { %v3946_v60 = vpop.eup %3945 }
 0x4f3   :  { %421 = vrot.lane.b32.xlu0 %v3946_v60, %s4261_s2 }
 0x565   :  { %v422_v61 = vpop.permute.xlu0 %421 }
 0x566   :  { %v4471_v62 = vmul.f32 %v3944_v53, %v422_v61 }
 0x568   :  { %v431_v63 = vrot.slane %v4471_v62, 4 }
 0x56a   :  { %432 = vrot.lane.b32.xlu1 %v431_v63, %s4262_s7 }
 0x5dc   :  { %v433_v2 = vpop.permute.xlu1 %432 }
 0x5dd   :  { %3371 = vmatmul.mubr.msk.f32.vlgmr.msra.gmra.mrb[0].mxu1 %vm211_vm3, %v433_v2 }
 0x5de   :  { %3724 = vmatpush3.bf16.msra.mxu1 %v4396_v7  ;;  %3392 = vmatprep.mubr.msk.f32.mxu1 %vm4260_vm0, %v4258_v0 }
 0x5df   :  { %3725 = vmatprep.subr.bf16.mxu1 %v4259_v1 }
 0x5e2   :  { %3727 = vmatpush3.bf16.msra.mxu1 %v4412_v11 }
 0x5e3   :  { %3734 = vmatprep.subr.bf16.mxu1 %v4259_v1 }
 0x6b0   :  { %v502_v3 = vpop.f32.mrb[0].mxu1 }
 0x6b1   :  { %v507_v4 = vrot.slane %v502_v3, 6  ;;  %v3372_v5 = vpop.f32.mrb[1].mxu1 }
 0x6b3   :  { %v509_v6 = vadd.f32 %v507_v4, %v4450_v26 }
 0x6b5   :  { %3947 = vtanh.f32 %v509_v6  ;;  %v3126_v9 = vmul.f32 -1.442695, %v509_v6 }
 0x6b7   :  { %3949 = vpow2.f32 %v3126_v9 }
 0x6bf   :  { %v3948_v8 = vpop.eup %3947 }
 0x6c0   :  { %522 = vrot.lane.b32.xlu0 %v3948_v8, %s4261_s2 }
 0x6c1   :  { %v3950_v10 = vpop.eup %3949 }
 0x6c2   :  { %v513_v12 = vadd.f32 1.0, %v3950_v10 }
 0x6c4   :  { %3951 = vrcp.f32 %v513_v12 }
 0x6ce   :  { %v3952_v15 = vpop.eup %3951 }
 0x6cf   :  { %v520_v24 = vmul.f32 %v3952_v15, %v518_v22 }
 0x732   :  { %v523_v16 = vpop.permute.xlu0 %522 }
 0x733   :  { %v525_v19 = vmul.f32 %v3952_v15, %v523_v16 }
 0x735   :  { %527 = vrot.lane.b32.xlu1 %v525_v19, %s4262_s7 }
 0x7a7   :  { %v528_v25 = vpop.permute.xlu1 %527 }
 0x7a8   :  { %v530_v27 = vadd.f32 %v528_v25, %v520_v24 }
 0x7aa   :  { %3953 = vtanh.f32 %v530_v27  ;;  %v627_v44 = vrot.slane %v530_v27, 2 }
 0x7b4   :  { %v3954_v28 = vpop.eup %3953 }
 0x7b5   :  { %533 = vrot.lane.b32.xlu0 %v3954_v28, %s4261_s2 }
 0x827   :  { %v534_v29 = vpop.permute.xlu0 %533 }
 0x828   :  { %v4486_v30 = vmul.f32 %v3952_v15, %v534_v29 }
 0x82a   :  { %v543_v31 = vrot.slane %v4486_v30, 2 }
 0x82c   :  { %544 = vrot.lane.b32.xlu1 %v543_v31, %s4262_s7 }
 0x89e   :  { %v545_v32 = vpop.permute.xlu1 %544 }
 0x89f   :  { %3382 = vmatmul.mubr.msk.f32.vlgmr.msra.gmra.mrb[8].mxu0 %vm211_vm3, %v545_v32 }
 0x8a0   :  { %3730 = vmatpush3.bf16.msra.mxu0 %v4396_v7  ;;  %3403 = vmatprep.mubr.msk.f32.mxu0 %vm4260_vm0, %v4258_v0 }
 0x8a1   :  { %3731 = vmatprep.subr.bf16.mxu0 %v4259_v1 }
 0x8a4   :  { %3733 = vmatpush3.bf16.msra.mxu0 %v4412_v11 }
 0x8a5   :  { %3740 = vmatprep.subr.bf16.mxu0 %v4259_v1 }
 0x972   :  { %v614_v33 = vpop.f32.mrb[8].mxu0 }
 0x973   :  { %v618_v34 = vadd.f32 %v614_v33, %v4450_v26  ;;  %v3383_v35 = vpop.f32.mrb[9].mxu0 }
 0x975   :  { %3955 = vtanh.f32 %v618_v34  ;;  %v3128_v37 = vmul.f32 -1.442695, %v618_v34 }
 0x977   :  { %3957 = vpow2.f32 %v3128_v37 }
 0x97f   :  { %v3956_v36 = vpop.eup %3955 }
 0x980   :  { %631 = vrot.lane.b32.xlu0 %v3956_v36, %s4261_s2 }
 0x981   :  { %v3958_v38 = vpop.eup %3957 }
 0x982   :  { %v622_v39 = vadd.f32 1.0, %v3958_v38 }
 0x984   :  { %3959 = vrcp.f32 %v622_v39 }
 0x98e   :  { %v3960_v40 = vpop.eup %3959 }
 0x98f   :  { %v629_v45 = vmul.f32 %v3960_v40, %v627_v44 }
 0x9f2   :  { %v632_v41 = vpop.permute.xlu0 %631 }
 0x9f3   :  { %v634_v43 = vmul.f32 %v3960_v40, %v632_v41 }
 0x9f5   :  { %636 = vrot.lane.b32.xlu1 %v634_v43, %s4262_s7 }
 0xa67   :  { %v637_v46 = vpop.permute.xlu1 %636 }
 0xa68   :  { %v639_v47 = vadd.f32 %v637_v46, %v629_v45 }
 0xa6a   :  { %3961 = vtanh.f32 %v639_v47  ;;  %v736_v63 = vrot.slane %v639_v47, 2 }
 0xa74   :  { %v3962_v26 = vpop.eup %3961 }
 0xa75   :  { %642 = vrot.lane.b32.xlu0 %v3962_v26, %s4261_s2 }
 0xae7   :  { %v643_v48 = vpop.permute.xlu0 %642 }
 0xae8   :  { %v645_v49 = vmul.f32 %v3960_v40, %v643_v48 }
 0xaea   :  { %647 = vrot.lane.b32.xlu1 %v645_v49, %s4262_s7 }
 0xb5c   :  { %v648_v50 = vpop.permute.xlu1 %647 }
 0xb5d   :  { %651 = vst.msk [vmem:[#allocation2 + $0x8] sm:$0x3] %vm650_vm4, %v648_v50  ;;  %3393 = vmatmul.mubr.msk.f32.vlgmr.msra.gmra.mrb[2].mxu1 %vm211_vm3, %v648_v50 }
 0xb5e   :  { %3736 = vmatpush3.bf16.msra.mxu1 %v4396_v7  ;;  %3414 = vmatprep.mubr.msk.f32.mxu1 %vm4260_vm0, %v4258_v0 }
 0xb5f   :  { %3737 = vmatprep.subr.bf16.mxu1 %v4259_v1 }
 0xb62   :  { %3739 = vmatpush3.bf16.msra.mxu1 %v4412_v11 }
 0xc30   :  { %v720_v51 = vpop.f32.mrb[2].mxu1 }
 0xc31   :  { %v725_v52 = vrot.slane %v720_v51, 2  ;;  %v3394_v53 = vpop.f32.mrb[3].mxu1 }
 0xc33   :  { %v727_v54 = vadd.f32 %v725_v52, %v4441_v20 }
 0xc35   :  { %3963 = vtanh.f32 %v727_v54  ;;  %v3130_v56 = vmul.f32 -1.442695, %v727_v54 }
 0xc37   :  { %3965 = vpow2.f32 %v3130_v56 }
 0xc3f   :  { %v3964_v55 = vpop.eup %3963 }
 0xc40   :  { %740 = vrot.lane.b32.xlu0 %v3964_v55, %s4261_s2 }
 0xc41   :  { %v3966_v57 = vpop.eup %3965 }
 0xc42   :  { %v731_v58 = vadd.f32 1.0, %v3966_v57 }
 0xc44   :  { %3967 = vrcp.f32 %v731_v58  ;;  %v203_v58 = vld [vmem:[%s4974_s3] sm:$0xff] }
 0xc4e   :  { %v3968_v59 = vpop.eup %3967 }
 0xc4f   :  { %v738_v2 = vmul.f32 %v3968_v59, %v736_v63  ;;  %v206_v63 = vld [vmem:[%s4974_s3 + $0x18] sm:$0xff] }
 0xcb2   :  { %v741_v60 = vpop.permute.xlu0 %740 }
 0xcb3   :  { %v743_v61 = vmul.f32 %v3968_v59, %v741_v60 }
 0xcb5   :  { %745 = vrot.lane.b32.xlu1 %v743_v61, %s4262_s7  ;;  %v205_v61 = vld [vmem:[%s4974_s3 + $0x10] sm:$0xff] }
 0xd27   :  { %v746_v3 = vpop.permute.xlu1 %745 }
 0xd28   :  { %v748_v4 = vadd.f32 %v746_v3, %v738_v2  ;;  %v4558_v3 = vpack.c.bf16 %v206_v63, %v205_v61  ;;  %v1195_v61 = vld [vmem:[%s4976_s5 + $0x8] sm:$0xff] }
 0xd2a   :  { %3969 = vtanh.f32 %v748_v4 }
 0xd34   :  { %v3970_v5 = vpop.eup %3969 }
 0xd35   :  { %751 = vrot.lane.b32.xlu0 %v3970_v5, %s4261_s2 }
 0xda7   :  { %v752_v6 = vpop.permute.xlu0 %751 }
 0xda8   :  { %v4513_v8 = vmul.f32 %v3968_v59, %v752_v6  ;;  %v204_v59 = vld [vmem:[%s4974_s3 + $0x8] sm:$0xff] }
 0xda9   :  { %v4548_v60 = vpack.c.bf16 %v204_v59, %v203_v58 }
 0xdaa   :  { %v760_v9 = vrot.slane %v4513_v8, 6 }
 0xdac   :  { %761 = vrot.lane.b32.xlu1 %v760_v9, %s4262_s7  ;;  %v4575_v9 = vadd.f32 %v4439_v18, %v4445_v21 }
 0xe1e   :  { %v762_v10 = vpop.permute.xlu1 %761 }
 0xe1f   :  { %3404 = vmatmul.mubr.msk.f32.vlgmr.msra.gmra.mrb[10].mxu0 %vm211_vm3, %v762_v10 }
 0xe20   :  { %3742 = vmatpush3.bf16.msra.mxu0 %v4396_v7  ;;  %3425 = vmatprep.mubr.msk.f32.mxu0 %vm4260_vm0, %v4258_v0 }
 0xe21   :  { %3743 = vmatprep.subr.bf16.mxu0 %v4259_v1 }
 0xe24   :  { %3745 = vmatpush3.bf16.msra.mxu0 %v4412_v11  ;;  %v847_v11 = vrot.slane %v748_v4, 2 }
 0xe25   :  { %3754 = vmatprep.subr.bf16.mxu0 %v4259_v1 }
 0xef2   :  { %v831_v12 = vpop.f32.mrb[10].mxu0 }
 0xef3   :  { %v836_v15 = vrot.slane %v831_v12, 4  ;;  %v3405_v16 = vpop.f32.mrb[11].mxu0 }
 0xef5   :  { %v838_v19 = vadd.f32 %v836_v15, %v4441_v20 }
 0xef7   :  { %3971 = vtanh.f32 %v838_v19  ;;  %v3132_v24 = vmul.f32 -1.442695, %v838_v19 }
 0xef9   :  { %3973 = vpow2.f32 %v3132_v24 }
 0xf01   :  { %v3972_v22 = vpop.eup %3971 }
 0xf02   :  { %851 = vrot.lane.b32.xlu0 %v3972_v22, %s4261_s2 }
 0xf03   :  { %v3974_v7 = vpop.eup %3973 }
 0xf04   :  { %v842_v25 = vadd.f32 1.0, %v3974_v7 }
 0xf06   :  { %3975 = vrcp.f32 %v842_v25 }
 0xf10   :  { %v3976_v27 = vpop.eup %3975 }
 0xf11   :  { %v849_v31 = vmul.f32 %v3976_v27, %v847_v11 }
 0xf74   :  { %v852_v28 = vpop.permute.xlu0 %851 }
 0xf75   :  { %v854_v29 = vmul.f32 %v3976_v27, %v852_v28 }
 0xf77   :  { %856 = vrot.lane.b32.xlu1 %v854_v29, %s4262_s7 }
 0xfe9   :  { %v857_v32 = vpop.permute.xlu1 %856 }
 0xfea   :  { %v859_v33 = vadd.f32 %v857_v32, %v849_v31 }
 0xfec   :  { %3977 = vtanh.f32 %v859_v33  ;;  %v958_v50 = vrot.slane %v859_v33, 2 }
 0xff6   :  { %v3978_v34 = vpop.eup %3977 }
 0xff7   :  { %862 = vrot.lane.b32.xlu0 %v3978_v34, %s4261_s2 }
0x1069   :  { %v863_v35 = vpop.permute.xlu0 %862 }
0x106a   :  { %v4528_v36 = vmul.f32 %v3976_v27, %v863_v35 }
0x106c   :  { %v871_v37 = vrot.slane %v4528_v36, 4 }
0x106e   :  { %872 = vrot.lane.b32.xlu1 %v871_v37, %s4262_s7 }
0x10e0   :  { %v873_v38 = vpop.permute.xlu1 %872 }
0x10e1   :  { %3415 = vmatmul.mubr.msk.f32.vlgmr.msra.gmra.mrb[4].mxu1 %vm211_vm3, %v873_v38 }
0x10e2   :  { %1182 = vmatprep.mubr.f32.mxu1 %v4258_v0 }
0x11b4   :  { %v942_v39 = vpop.f32.mrb[4].mxu1 }
0x11b5   :  { %v947_v40 = vrot.slane %v942_v39, 6  ;;  %v3416_v41 = vpop.f32.mrb[5].mxu1 }
0x11b6   :  { %v1093_v41 = vld [vmem:[#allocation3 + $0x8] sm:$0xff] }
0x11b7   :  { %v949_v43 = vadd.f32 %v947_v40, %v4441_v20 }
0x11b9   :  { %3979 = vtanh.f32 %v949_v43  ;;  %v3134_v45 = vmul.f32 -1.442695, %v949_v43  ;;  %v1095_v43 = vld [vmem:[#allocation3 + $0x18] sm:$0xff] }
0x11bb   :  { %3981 = vpow2.f32 %v3134_v45 }
0x11c3   :  { %v3980_v44 = vpop.eup %3979 }
0x11c4   :  { %962 = vrot.lane.b32.xlu0 %v3980_v44, %s4261_s2  ;;  %v3746_v44 = vpack.c.bf16 %v1095_v43, %v1093_v41 }
0x11c5   :  { %v3982_v46 = vpop.eup %3981 }
0x11c6   :  { %v953_v47 = vadd.f32 1.0, %v3982_v46  ;;  %3747 = vmatprep.subr.bf16.mxu1 %v3746_v44  ;;  %v1092_v46 = vld [vmem:[#allocation3] sm:$0xff] }
0x11c8   :  { %3983 = vrcp.f32 %v953_v47  ;;  %v1094_v47 = vld [vmem:[#allocation3 + $0x10] sm:$0xff] }
0x11d2   :  { %v3984_v26 = vpop.eup %3983 }
0x11d3   :  { %v960_v51 = vmul.f32 %v3984_v26, %v958_v50  ;;  %v1096_v50 = vld [vmem:[#allocation3 + $0x20] sm:$0xff] }
0x1236   :  { %v963_v48 = vpop.permute.xlu0 %962 }
0x1237   :  { %v965_v49 = vmul.f32 %v3984_v26, %v963_v48  ;;  %v1099_v48 = vld [vmem:[#allocation3 + $0x38] sm:$0xff] }
0x1239   :  { %967 = vrot.lane.b32.xlu1 %v965_v49, %s4262_s7 }
0x12ab   :  { %v968_v52 = vpop.permute.xlu1 %967 }
0x12ac   :  { %v970_v53 = vadd.f32 %v968_v52, %v960_v51  ;;  %v1098_v51 = vld [vmem:[#allocation3 + $0x30] sm:$0xff] }
0x12ad   :  { %v3752_v52 = vpack.c.bf16 %v1098_v51, %v1096_v50 }
0x12ae   :  { %3985 = vtanh.f32 %v970_v53  ;;  %v1066_v32 = vrot.slane %v970_v53, 2 }
0x12b8   :  { %v3986_v54 = vpop.eup %3985 }
0x12b9   :  { %973 = vrot.lane.b32.xlu0 %v3986_v54, %s4261_s2 }
0x132b   :  { %v974_v55 = vpop.permute.xlu0 %973 }
0x132c   :  { %v4538_v56 = vmul.f32 %v3984_v26, %v974_v55  ;;  %v1097_v26 = vld [vmem:[#allocation3 + $0x28] sm:$0xff] }
0x132d   :  { %v3750_v49 = vpack.c.bf16 %v1099_v48, %v1097_v26 }
0x132e   :  { %v982_v57 = vrot.slane %v4538_v56, 2 }
0x1330   :  { %983 = vrot.lane.b32.xlu1 %v982_v57, %s4262_s7 }
0x13a2   :  { %v984_v2 = vpop.permute.xlu1 %983 }
0x13a3   :  { %3426 = vmatmul.mubr.msk.f32.vlgmr.msra.gmra.mrb[12].mxu0 %vm211_vm3, %v984_v2 }
0x13a4   :  { %3756 = vmatpush3.bf16.msra.mxu0 %v4548_v60  ;;  %3436 = vmatprep.mubr.msk.f32.mxu0 %vm4260_vm0, %v4258_v0 }
0x13a5   :  { %3757 = vmatprep.subr.bf16.mxu0 %v4259_v1 }
0x13a8   :  { %3759 = vmatpush3.bf16.msra.mxu0 %v4558_v3 }
0x13a9   :  { %3772 = vmatprep.subr.bf16.mxu0 %v4259_v1 }
0x13ab   :  { %3437 = vmatmul.mubr.f32.vlgmr.msra.gmra.mrb[14].mxu0 %v4258_v0 }
0x13ac   :  { %3774 = vmatpush3.bf16.msra.mxu0 %v4548_v60  ;;  %3466 = vmatprep.mubr.msk.f32.mxu0 %vm4260_vm0, %v4258_v0 }
0x13ad   :  { %3775 = vmatprep.subr.bf16.mxu0 %v4259_v1 }
0x13b0   :  { %3777 = vmatpush3.bf16.msra.mxu0 %v4558_v3 }
0x13b1   :  { %3778 = vmatprep.subr.bf16.mxu0 %v4259_v1 }
0x1476   :  { %v1053_v4 = vpop.f32.mrb[12].mxu0 }
0x1477   :  { %v1057_v5 = vadd.f32 %v1053_v4, %v4441_v20  ;;  %v3427_v6 = vpop.f32.mrb[13].mxu0  ;;  %v1196_v4 = vld [vmem:[%s4976_s5 + $0x10] sm:$0xff] }
0x1479   :  { %3987 = vtanh.f32 %v1057_v5  ;;  %v3136_v22 = vmul.f32 -1.442695, %v1057_v5  ;;  %v1197_v5 = vld [vmem:[%s4976_s5 + $0x18] sm:$0xff] }
0x147e   :  { %v1268_v10 = vpop.f32.mrb[14].mxu0 }
0x147f   :  { %v1272_v12 = vadd.f32 %v1268_v10, %v4575_v9  ;;  %v3438_v15 = vpop.f32.mrb[15].mxu0 }
0x1480   :  { %v1198_v15 = vld [vmem:[%s4976_s5 + $0x20] sm:$0xff] }
0x1481   :  { %3989 = vtanh.f32 %v1272_v12  ;;  %v3139_v20 = vmul.f32 -1.442695, %v1272_v12  ;;  %v4621_v12 = vpack.c.bf16 %v1197_v5, %v1196_v4 }
0x1482   :  { %3991 = vpow2.f32 %v3136_v22 }
0x1483   :  { %v3988_v16 = vpop.eup %3987  ;;  %3993 = vpow2.f32 %v3139_v20  ;;  %v1200_v20 = vld [vmem:[%s4976_s5 + $0x30] sm:$0xff] }
0x1484   :  { %1070 = vrot.lane.b32.xlu0 %v3988_v16, %s4261_s2  ;;  %v1199_v16 = vld [vmem:[%s4976_s5 + $0x28] sm:$0xff] }
0x1485   :  { %v4636_v22 = vpack.c.bf16 %v1199_v16, %v1198_v15 }
0x148b   :  { %v3990_v19 = vpop.eup %3989 }
0x148c   :  { %1282 = vrot.lane.b32.xlu1 %v3990_v19, %s4261_s2  ;;  %v3992_v24 = vpop.eup %3991 }
0x148d   :  { %v1061_v7 = vadd.f32 1.0, %v3992_v24  ;;  %v3994_v18 = vpop.eup %3993  ;;  %v1201_v24 = vld [vmem:[%s4976_s5 + $0x38] sm:$0xff] }
0x148e   :  { %v1276_v21 = vadd.f32 1.0, %v3994_v18 }
0x148f   :  { %3995 = vrcp.f32 %v1061_v7  ;;  %v4650_v7 = vpack.c.bf16 %v1201_v24, %v1200_v20 }
0x1490   :  { %3997 = vrcp.f32 %v1276_v21  ;;  %v1100_v21 = vld [vmem:[#allocation6] sm:$0x3] }
0x1499   :  { %v3996_v25 = vpop.eup %3995 }
0x149a   :  { %v3998_v29 = vpop.eup %3997  ;;  %v1068_v33 = vmul.f32 %v3996_v25, %v1066_v32 }
0x149b   :  { %v1280_v37 = vmul.f32 0.0, %v3998_v29 }
0x14f6   :  { %v1071_v27 = vpop.permute.xlu0 %1070 }
0x14f7   :  { %v1073_v28 = vmul.f32 %v3996_v25, %v1071_v27 }
0x14f9   :  { %1075 = vrot.lane.b32.xlu0 %v1073_v28, %s4262_s7 }
0x14fe   :  { %v1283_v11 = vpop.permute.xlu1 %1282 }
0x14ff   :  { %v1285_v31 = vmul.f32 %v3998_v29, %v1283_v11 }
0x1501   :  { %1287 = vrot.lane.b32.xlu1 %v1285_v31, %s4262_s7  ;;  %v1105_v31 = vrot.slane %v1100_v21, %v97_v17 }
0x156b   :  { %v1076_v34 = vpop.permute.xlu0 %1075 }
0x156c   :  { %v1078_v35 = vadd.f32 %v1076_v34, %v1068_v33 }
0x156e   :  { %3999 = vtanh.f32 %v1078_v35 }
0x1573   :  { %v1288_v38 = vpop.permute.xlu1 %1287 }
0x1574   :  { %v4582_v39 = vadd.f32 %v1288_v38, %v1280_v37 }
0x1576   :  { %4001 = vtanh.f32 %v4582_v39 }
0x1578   :  { %v4000_v40 = vpop.eup %3999 }
0x1579   :  { %1081 = vrot.lane.b32.xlu0 %v4000_v40, %s4261_s2 }
0x157d   :  { %756 = vrot.lane.b32.xlu0 %v4513_v8, %s4262_s7  ;;  %v3748_v8 = vpack.c.bf16 %v1094_v47, %v1092_v46 }
0x157f   :  { %3749 = vmatpush1.bf16.msra.mxu1 %v3748_v8 }
0x1580   :  { %v4002_v45 = vpop.eup %4001  ;;  %3751 = vmatprep.subr.bf16.mxu1 %v3750_v49 }
0x1581   :  { %1293 = vrot.lane.b32.xlu1 %v4002_v45, %s4261_s2  ;;  %978 = vrot.lane.b32.xlu0 %v4538_v56, %s4262_s7 }
0x1583   :  { %3753 = vmatpush1.bf16.msra.mxu1 %v3752_v52 }
0x1584   :  { %3760 = vmatprep.subr.bf16.mxu1 %v4259_v1 }
0x1585   :  { %867 = vrot.lane.b32.xlu1 %v4528_v36, %s4262_s7  ;;  %314 = vrot.lane.b32.xlu0 %v4456_v42, %s4262_s7 }
0x1589   :  { %538 = vrot.lane.b32.xlu0 %v4486_v30, %s4262_s7 }
0x15eb   :  { %v1082_v36 = vpop.permute.xlu0 %1081 }
0x15ec   :  { %v1084_v53 = vmul.f32 %v3996_v25, %v1082_v36 }
0x15ee   :  { %1086 = vrot.lane.b32.xlu1 %v1084_v53, %s4262_s7  ;;  %v1484_v53 = vrot.slane %v4582_v39, 6 }
0x15ef   :  { %v757_v42 = vpop.permute.xlu0 %756 }
0x15f0   :  { %759 = vst.msk [vmem:[#allocation2] sm:$0xc0] %vm317_vm5, %v757_v42 }
0x15f2   :  { %426 = vrot.lane.b32.xlu1 %v4471_v62, %s4262_s7  ;;  %v1194_v62 = vld [vmem:[%s4976_s5] sm:$0xff]  ;;  %s4263_s5 = smov 96  }
0x15f3   :  { %v1294_v30 = vpop.permute.xlu1 %1293  ;;  %v979_v54 = vpop.permute.xlu0 %978  ;;  %v4609_v2 = vpack.c.bf16 %v1195_v61, %v1194_v62 }
0x15f4   :  { %v1296_v55 = vmul.f32 %v3998_v29, %v1294_v30  ;;  %981 = vst.msk [vmem:[#allocation2] sm:$0xc] %vm541_vm6, %v979_v54 }
0x15f6   :  { %1298 = vrot.lane.b32.xlu1 %v1296_v55, %s4262_s7 }
0x15f7   :  { %v868_v56 = vpop.permute.xlu1 %867  ;;  %v315_v57 = vpop.permute.xlu0 %314 }
0x15f8   :  { %870 = vst.msk [vmem:[#allocation2] sm:$0x30] %vm429_vm7, %v868_v56 }
0x15f9   :  { %318 = vst.msk [vmem:[#allocation2 + $0x8] sm:$0xc0] %vm317_vm5, %v315_v57 }
0x15fb   :  { %v539_v58 = vpop.permute.xlu0 %538 }
0x15fc   :  { %542 = vst.msk [vmem:[#allocation2 + $0x8] sm:$0xc] %vm541_vm6, %v539_v58 }
0x1660   :  { %v1087_v59 = vpop.permute.xlu1 %1086 }
0x1661   :  { %1089 = vst.msk [vmem:[#allocation2] sm:$0x3] %vm650_vm4, %v1087_v59 }
0x1664   :  { %v427_v63 = vpop.permute.xlu1 %426 }
0x1665   :  { %430 = vst.msk [vmem:[#allocation2 + $0x8] sm:$0x30] %vm429_vm7, %v427_v63 }
0x1668   :  { %v1299_v6 = vpop.permute.xlu1 %1298  ;;  %v1090_v10 = vld [vmem:[#allocation2] sm:$0xff] }
0x1669   :  { %3137 = vmatmul.mubr.msk.f32.vlgmr.msra.gmra.mrb[6].mxu1 %vm211_vm3, %v1090_v10  ;;  %3467 = vmatmul.mubr.msk.f32.vlgmr.msra.gmra.mrb[16].mxu0 %vm211_vm3, %v1299_v6  ;;  %v1301_v18 = vsel %vm211_vm3, %v1299_v6, 0.0 }
0x166a   :  { %3762 = vmatpush3.bf16.msra.mxu1 %v4609_v2  ;;  %1187 = vmatprep.mubr.f32.mxu1 %v4258_v0 }
0x166b   :  { %3763 = vmatprep.subr.bf16.mxu1 %v4259_v1  ;;  %3780 = vmatpush3.bf16.msra.mxu0 %v4609_v2 }
0x166c   :  { %v1091_v19 = vld [vmem:[#allocation2 + $0x8] sm:$0xff]  ;;  %3781 = vmatprep.subr.bf16.mxu0 %v4259_v1  ;;  %3485 = vmatprep.mubr.msk.f32.mxu0 %vm4260_vm0, %v4258_v0 }
0x166d   :  { %3138 = vmatmul.mubr.msk.f32.gmra.mrb[8].mxu1 %vm211_vm3, %v1091_v19 }
0x166e   :  { %3765 = vmatpush3.bf16.msra.mxu1 %v4621_v12  ;;  %3455 = vmatprep.mubr.msk.f32.mxu1 %vm4260_vm0, %v4258_v0 }
0x166f   :  { %3766 = vmatprep.subr.bf16.mxu1 %v4259_v1  ;;  %3783 = vmatpush3.bf16.msra.mxu0 %v4621_v12 }
0x1670   :  { %3784 = vmatprep.subr.bf16.mxu0 %v4259_v1 }
0x1672   :  { %3768 = vmatpush3.bf16.msra.mxu1 %v4636_v22 }
0x1673   :  { %3769 = vmatprep.subr.bf16.mxu1 %v4259_v1  ;;  %3786 = vmatpush3.bf16.msra.mxu0 %v4636_v22 }
0x1674   :  { %3787 = vmatprep.subr.bf16.mxu0 %v4259_v1 }
0x1676   :  { %3771 = vmatpush3.bf16.msra.mxu1 %v4650_v7 }
0x1677   :  { %3790 = vmatprep.subr.bf16.mxu1 %v4259_v1  ;;  %3789 = vmatpush3.bf16.msra.mxu0 %v4650_v7 }
0x1678   :  { %3808 = vmatprep.subr.bf16.mxu0 %v4259_v1 }
0x1679   :  { %3456 = vmatmul.mubr.msk.f32.vlgmr.msra.gmra.mrb[10].mxu1 %vm1302_vm8, %v1301_v18 }
0x167a   :  { %3792 = vmatpush3.bf16.msra.mxu1 %v4548_v60  ;;  %3496 = vmatprep.mubr.msk.f32.mxu1 %vm4260_vm0, %v4258_v0 }
0x167b   :  { %3793 = vmatprep.subr.bf16.mxu1 %v4259_v1 }
0x167e   :  { %3795 = vmatpush3.bf16.msra.mxu1 %v4558_v3 }
0x167f   :  { %3796 = vmatprep.subr.bf16.mxu1 %v4259_v1 }
0x173c   :  { %v1184_v25 = vpop.f32.mrb[6].mxu1  ;;  %v1468_v27 = vpop.f32.mrb[16].mxu0 }
0x173d   :  { %v1473_v28 = vrot.slane %v1468_v27, 6  ;;  %v1186_v29 = vpop.f32.mrb[7].mxu1  ;;  %v3468_v11 = vpop.f32.mrb[17].mxu0  ;;  %v4674_v38 = vadd.f32 %v1184_v25, %v1105_v31 }
0x173f   :  { %v1475_v32 = vadd.f32 %v1473_v28, %v4575_v9  ;;  %v1516_v25 = vrot.slane %v4674_v38, 2 }
0x1740   :  { %v1189_v33 = vpop.f32.mrb[8].mxu1 }
0x1741   :  { %4003 = vtanh.f32 %v1475_v32  ;;  %v4670_v34 = vadd.f32 %v1189_v33, %v1105_v31  ;;  %v4672_v35 = vpop.f32.mrb[9].mxu1  ;;  %v3143_v17 = vmul.f32 -1.442695, %v1475_v32 }
0x174b   :  { %v4004_v37 = vpop.eup %4003 }
0x174c   :  { %v1372_v40 = vpop.f32.mrb[10].mxu1  ;;  %1488 = vrot.lane.b32.xlu1 %v4004_v37, %s4261_s2 }
0x174d   :  { %v1373_v41 = vadd.f32 %v1372_v40, %v4674_v38  ;;  %v3457_v43 = vpop.f32.mrb[11].mxu1 }
0x174f   :  { %4005 = vtanh.f32 %v1373_v41  ;;  %v3141_v46 = vmul.f32 -1.442695, %v1373_v41 }
0x1750   :  { %4007 = vpow2.f32 %v3143_v17 }
0x1751   :  { %4009 = vpow2.f32 %v3141_v46 }
0x1759   :  { %v4006_v44 = vpop.eup %4005 }
0x175a   :  { %1385 = vrot.lane.b32.xlu0 %v4006_v44, %s4261_s2  ;;  %v4008_v45 = vpop.eup %4007 }
0x175b   :  { %v1479_v47 = vadd.f32 1.0, %v4008_v45  ;;  %v4010_v8 = vpop.eup %4009 }
0x175c   :  { %v1379_v48 = vadd.f32 1.0, %v4010_v8 }
0x175d   :  { %4011 = vrcp.f32 %v1479_v47 }
0x175e   :  { %4013 = vrcp.f32 %v1379_v48 }
0x1767   :  { %v4012_v26 = vpop.eup %4011 }
0x1768   :  { %v4014_v51 = vpop.eup %4013  ;;  %v1486_v42 = vmul.f32 %v4012_v26, %v1484_v53 }
0x1769   :  { %v1383_v56 = vmul.f32 0.0, %v4014_v51 }
0x17be   :  { %v1489_v49 = vpop.permute.xlu1 %1488 }
0x17bf   :  { %v1491_v50 = vmul.f32 %v4012_v26, %v1489_v49 }
0x17c1   :  { %1493 = vrot.lane.b32.xlu1 %v1491_v50, %s4262_s7 }
0x17cc   :  { %v1386_v52 = vpop.permute.xlu0 %1385 }
0x17cd   :  { %v1388_v36 = vmul.f32 %v4014_v51, %v1386_v52 }
0x17cf   :  { %1390 = vrot.lane.b32.xlu0 %v1388_v36, %s4262_s7 }
0x1833   :  { %v1494_v30 = vpop.permute.xlu1 %1493 }
0x1834   :  { %v4682_v54 = vadd.f32 %v1494_v30, %v1486_v42 }
0x1836   :  { %4015 = vtanh.f32 %v4682_v54 }
0x1840   :  { %v4016_v55 = vpop.eup %4015 }
0x1841   :  { %v1391_v57 = vpop.permute.xlu0 %1390  ;;  %1499 = vrot.lane.b32.xlu1 %v4016_v55, %s4261_s2 }
0x1842   :  { %v4686_v58 = vadd.f32 %v1391_v57, %v1383_v56 }
0x1844   :  { %4017 = vtanh.f32 %v4686_v58 }
0x184e   :  { %v4018_v59 = vpop.eup %4017 }
0x184f   :  { %1396 = vrot.lane.b32.xlu0 %v4018_v59, %s4261_s2 }
0x18b3   :  { %v1500_v62 = vpop.permute.xlu1 %1499 }
0x18b4   :  { %v1502_v39 = vmul.f32 %v4012_v26, %v1500_v62  ;;  %v1701_v26 = vrot.slane %v4682_v54, 6 }
0x18b6   :  { %1504 = vrot.lane.b32.xlu0 %v1502_v39, %s4262_s7  ;;  %v1614_v61 = vrot.slane %v1502_v39, 2 }
0x18ba   :  { %1615 = vrot.lane.b32.xlu0 %v1614_v61, %s4262_s7 }
0x18c1   :  { %v1397_v63 = vpop.permute.xlu0 %1396 }
0x18c2   :  { %v1399_v4 = vmul.f32 %v4014_v51, %v1397_v63 }
0x18c4   :  { %v1508_v5 = vrot.slane %v1399_v4, 6 }
0x18c6   :  { %1509 = vrot.lane.b32.xlu1 %v1508_v5, %s4261_s2 }
0x1928   :  { %v1505_v6 = vpop.permute.xlu0 %1504 }
0x192c   :  { %v1616_v10 = vpop.permute.xlu0 %1615 }
0x192d   :  { %3497 = vmatmul.mubr.msk.f32.vlgmr.msra.gmra.mrb[12].mxu1 %vm211_vm3, %v1616_v10 }
0x192e   :  { %3798 = vmatpush3.bf16.msra.mxu1 %v4609_v2  ;;  %3515 = vmatprep.mubr.msk.f32.mxu1 %vm4260_vm0, %v4258_v0 }
0x192f   :  { %3799 = vmatprep.subr.bf16.mxu1 %v4259_v1 }
0x1932   :  { %3801 = vmatpush3.bf16.msra.mxu1 %v4621_v12 }
0x1933   :  { %3802 = vmatprep.subr.bf16.mxu1 %v4259_v1 }
0x1936   :  { %3804 = vmatpush3.bf16.msra.mxu1 %v4636_v22 }
0x1937   :  { %3805 = vmatprep.subr.bf16.mxu1 %v4259_v1 }
0x1938   :  { %v1510_v15 = vpop.permute.xlu1 %1509 }
0x1939   :  { %v1512_v16 = vsel %vm211_vm3, %v1505_v6, %v1510_v15  ;;  %v1732_v15 = vrot.slane %v4674_v38, 4 }
0x193a   :  { %v1514_v19 = vrot.slane %v1512_v16, 2  ;;  %3807 = vmatpush3.bf16.msra.mxu1 %v4650_v7 }
0x193b   :  { %3826 = vmatprep.subr.bf16.mxu1 %v4259_v1 }
0x193c   :  { %3486 = vmatmul.mubr.msk.f32.vlgmr.msra.gmra.mrb[18].mxu0 %vm1302_vm8, %v1514_v19 }
0x193d   :  { %3810 = vmatpush3.bf16.msra.mxu0 %v4548_v60  ;;  %3526 = vmatprep.mubr.msk.f32.mxu0 %vm4260_vm0, %v4258_v0 }
0x193e   :  { %3811 = vmatprep.subr.bf16.mxu0 %v4259_v1 }
0x1941   :  { %3813 = vmatpush3.bf16.msra.mxu0 %v4558_v3 }
0x1942   :  { %3814 = vmatprep.subr.bf16.mxu0 %v4259_v1 }
0x1a00   :  { %v1685_v20 = vpop.f32.mrb[12].mxu1 }
0x1a01   :  { %v1690_v24 = vrot.slane %v1685_v20, 4  ;;  %v3498_v18 = vpop.f32.mrb[13].mxu1 }
0x1a03   :  { %v1692_v21 = vadd.f32 %v1690_v24, %v4575_v9 }
0x1a05   :  { %4019 = vtanh.f32 %v1692_v21  ;;  %v3147_v32 = vmul.f32 -1.442695, %v1692_v21 }
0x1a0f   :  { %v4020_v27 = vpop.eup %4019  ;;  %v1586_v28 = vpop.f32.mrb[18].mxu0 }
0x1a10   :  { %v1587_v29 = vadd.f32 %v1586_v28, %v1516_v25  ;;  %v3487_v11 = vpop.f32.mrb[19].mxu0  ;;  %1705 = vrot.lane.b32.xlu0 %v4020_v27, %s4261_s2 }
0x1a12   :  { %4021 = vtanh.f32 %v1587_v29  ;;  %v3145_v33 = vmul.f32 -1.442695, %v1587_v29 }
0x1a13   :  { %4023 = vpow2.f32 %v3147_v32 }
0x1a14   :  { %4025 = vpow2.f32 %v3145_v33 }
0x1a1c   :  { %v4022_v31 = vpop.eup %4021 }
0x1a1d   :  { %1599 = vrot.lane.b32.xlu1 %v4022_v31, %s4261_s2  ;;  %v4024_v37 = vpop.eup %4023 }
0x1a1e   :  { %v1696_v40 = vadd.f32 1.0, %v4024_v37  ;;  %v4026_v41 = vpop.eup %4025 }
0x1a1f   :  { %v1593_v43 = vadd.f32 1.0, %v4026_v41 }
0x1a20   :  { %4027 = vrcp.f32 %v1696_v40 }
0x1a21   :  { %4029 = vrcp.f32 %v1593_v43 }
0x1a2a   :  { %v4028_v44 = vpop.eup %4027 }
0x1a2b   :  { %v4030_v46 = vpop.eup %4029  ;;  %v1703_v48 = vmul.f32 %v4028_v44, %v1701_v26 }
0x1a2c   :  { %v1597_v51 = vmul.f32 %v4030_v46, %v4686_v58 }
0x1a82   :  { %v1706_v17 = vpop.permute.xlu0 %1705 }
0x1a83   :  { %v1708_v45 = vmul.f32 %v4028_v44, %v1706_v17 }
0x1a85   :  { %1710 = vrot.lane.b32.xlu0 %v1708_v45, %s4262_s7 }
0x1a8f   :  { %v1600_v47 = vpop.permute.xlu1 %1599 }
0x1a90   :  { %v1602_v8 = vmul.f32 %v4030_v46, %v1600_v47 }
0x1a92   :  { %1604 = vrot.lane.b32.xlu1 %v1602_v8, %s4262_s7 }
0x1af7   :  { %v1711_v49 = vpop.permute.xlu0 %1710 }
0x1af8   :  { %v4719_v50 = vadd.f32 %v1711_v49, %v1703_v48 }
0x1afa   :  { %4031 = vtanh.f32 %v4719_v50  ;;  %v1917_v41 = vrot.slane %v4719_v50, 6 }
0x1b04   :  { %v4032_v52 = vpop.eup %4031  ;;  %v1605_v36 = vpop.permute.xlu1 %1604 }
0x1b05   :  { %v4723_v53 = vadd.f32 %v1605_v36, %v1597_v51  ;;  %1716 = vrot.lane.b32.xlu0 %v4032_v52, %s4261_s2 }
0x1b07   :  { %4033 = vtanh.f32 %v4723_v53 }
0x1b11   :  { %v4034_v42 = vpop.eup %4033 }
0x1b12   :  { %1610 = vrot.lane.b32.xlu1 %v4034_v42, %s4261_s2 }
0x1b77   :  { %v1717_v30 = vpop.permute.xlu0 %1716 }
0x1b78   :  { %v1719_v54 = vmul.f32 %v4028_v44, %v1717_v30 }
0x1b7a   :  { %1721 = vrot.lane.b32.xlu1 %v1719_v54, %s4262_s7  ;;  %v1830_v55 = vrot.slane %v1719_v54, 4 }
0x1b7e   :  { %1831 = vrot.lane.b32.xlu1 %v1830_v55, %s4262_s7 }
0x1b84   :  { %v1611_v56 = vpop.permute.xlu1 %1610 }
0x1b85   :  { %v1613_v57 = vmul.f32 %v4030_v46, %v1611_v56 }
0x1b87   :  { %v1725_v58 = vrot.slane %v1613_v57, 4 }
0x1b89   :  { %1726 = vrot.lane.b32.xlu0 %v1725_v58, %s4261_s2 }
0x1bec   :  { %v1722_v59 = vpop.permute.xlu1 %1721 }
0x1bf0   :  { %v1832_v62 = vpop.permute.xlu1 %1831 }
0x1bf1   :  { %3527 = vmatmul.mubr.msk.f32.vlgmr.msra.gmra.mrb[20].mxu0 %vm211_vm3, %v1832_v62 }
0x1bf2   :  { %3816 = vmatpush3.bf16.msra.mxu0 %v4609_v2  ;;  %3545 = vmatprep.mubr.msk.f32.mxu0 %vm4260_vm0, %v4258_v0 }
0x1bf3   :  { %3817 = vmatprep.subr.bf16.mxu0 %v4259_v1 }
0x1bf6   :  { %3819 = vmatpush3.bf16.msra.mxu0 %v4621_v12 }
0x1bf7   :  { %3820 = vmatprep.subr.bf16.mxu0 %v4259_v1 }
0x1bfa   :  { %3822 = vmatpush3.bf16.msra.mxu0 %v4636_v22 }
0x1bfb   :  { %v1727_v39 = vpop.permute.xlu0 %1726  ;;  %3823 = vmatprep.subr.bf16.mxu0 %v4259_v1 }
0x1bfc   :  { %v1729_v61 = vsel %vm211_vm3, %v1722_v59, %v1727_v39  ;;  %v1948_v59 = vrot.slane %v4674_v38, 6 }
0x1bfd   :  { %v1731_v63 = vrot.slane %v1729_v61, 4 }
0x1bfe   :  { %3825 = vmatpush3.bf16.msra.mxu0 %v4650_v7 }
0x1bff   :  { %3516 = vmatmul.mubr.msk.f32.vlgmr.msra.gmra.mrb[14].mxu1 %vm1302_vm8, %v1731_v63  ;;  %3844 = vmatprep.subr.bf16.mxu0 %v4259_v1 }
0x1c00   :  { %3828 = vmatpush3.bf16.msra.mxu1 %v4548_v60  ;;  %3556 = vmatprep.mubr.msk.f32.mxu1 %vm4260_vm0, %v4258_v0 }
0x1c01   :  { %3829 = vmatprep.subr.bf16.mxu1 %v4259_v1 }
0x1c04   :  { %3831 = vmatpush3.bf16.msra.mxu1 %v4558_v3 }
0x1c05   :  { %3832 = vmatprep.subr.bf16.mxu1 %v4259_v1 }
0x1cc4   :  { %v1901_v4 = vpop.f32.mrb[20].mxu0 }
0x1cc5   :  { %v1906_v5 = vrot.slane %v1901_v4, 2  ;;  %v3528_v6 = vpop.f32.mrb[21].mxu0 }
0x1cc7   :  { %v1908_v10 = vadd.f32 %v1906_v5, %v4575_v9 }
0x1cc9   :  { %4035 = vtanh.f32 %v1908_v10  ;;  %v3151_v21 = vmul.f32 -1.442695, %v1908_v10 }
0x1cd2   :  { %v1802_v16 = vpop.f32.mrb[14].mxu1 }
0x1cd3   :  { %v4036_v19 = vpop.eup %4035  ;;  %v1803_v20 = vadd.f32 %v1802_v16, %v1732_v15  ;;  %v3517_v24 = vpop.f32.mrb[15].mxu1 }
0x1cd4   :  { %1921 = vrot.lane.b32.xlu1 %v4036_v19, %s4261_s2 }
0x1cd5   :  { %4037 = vtanh.f32 %v1803_v20  ;;  %v3149_v25 = vmul.f32 -1.442695, %v1803_v20 }
0x1cd6   :  { %4039 = vpow2.f32 %v3151_v21 }
0x1cd7   :  { %4041 = vpow2.f32 %v3149_v25 }
0x1cdf   :  { %v4038_v18 = vpop.eup %4037 }
0x1ce0   :  { %1815 = vrot.lane.b32.xlu0 %v4038_v18, %s4261_s2  ;;  %v4040_v27 = vpop.eup %4039 }
0x1ce1   :  { %v1912_v28 = vadd.f32 1.0, %v4040_v27  ;;  %v4042_v9 = vpop.eup %4041 }
0x1ce2   :  { %v1809_v29 = vadd.f32 1.0, %v4042_v9 }
0x1ce3   :  { %4043 = vrcp.f32 %v1912_v28 }
0x1ce4   :  { %4045 = vrcp.f32 %v1809_v29 }
0x1ced   :  { %v4044_v11 = vpop.eup %4043 }
0x1cee   :  { %v4046_v33 = vpop.eup %4045  ;;  %v1919_v43 = vmul.f32 %v4044_v11, %v1917_v41 }
0x1cef   :  { %v1813_v45 = vmul.f32 %v4046_v33, %v4723_v53 }
0x1d46   :  { %v1922_v31 = vpop.permute.xlu1 %1921 }
0x1d47   :  { %v1924_v32 = vmul.f32 %v4044_v11, %v1922_v31 }
0x1d49   :  { %1926 = vrot.lane.b32.xlu1 %v1924_v32, %s4262_s7 }
0x1d52   :  { %v1816_v37 = vpop.permute.xlu0 %1815 }
0x1d53   :  { %v1818_v40 = vmul.f32 %v4046_v33, %v1816_v37 }
0x1d55   :  { %1820 = vrot.lane.b32.xlu0 %v1818_v40, %s4262_s7 }
0x1dbb   :  { %v1927_v44 = vpop.permute.xlu1 %1926 }
0x1dbc   :  { %v4757_v17 = vadd.f32 %v1927_v44, %v1919_v43 }
0x1dbe   :  { %4047 = vtanh.f32 %v4757_v17  ;;  %v2130_v27 = vrot.slane %v4757_v17, 6 }
0x1dc7   :  { %v1821_v46 = vpop.permute.xlu0 %1820 }
0x1dc8   :  { %v4048_v47 = vpop.eup %4047  ;;  %v4761_v8 = vadd.f32 %v1821_v46, %v1813_v45 }
0x1dc9   :  { %1932 = vrot.lane.b32.xlu1 %v4048_v47, %s4261_s2 }
0x1dca   :  { %4049 = vtanh.f32 %v4761_v8 }
0x1dd4   :  { %v4050_v26 = vpop.eup %4049 }
0x1dd5   :  { %1826 = vrot.lane.b32.xlu0 %v4050_v26, %s4261_s2 }
0x1e3b   :  { %v1933_v48 = vpop.permute.xlu1 %1932 }
0x1e3c   :  { %v1935_v49 = vmul.f32 %v4044_v11, %v1933_v48 }
0x1e3e   :  { %1937 = vrot.lane.b32.xlu0 %v1935_v49, %s4262_s7  ;;  %v2046_v50 = vrot.slane %v1935_v49, 6 }
0x1e42   :  { %2047 = vrot.lane.b32.xlu0 %v2046_v50, %s4262_s7 }
0x1e47   :  { %v1827_v51 = vpop.permute.xlu0 %1826 }
0x1e48   :  { %v1829_v52 = vmul.f32 %v4046_v33, %v1827_v51 }
0x1e4a   :  { %v1941_v36 = vrot.slane %v1829_v52, 2 }
0x1e4c   :  { %1942 = vrot.lane.b32.xlu1 %v1941_v36, %s4261_s2 }
0x1eb0   :  { %v1938_v53 = vpop.permute.xlu0 %1937 }
0x1eb4   :  { %v2048_v42 = vpop.permute.xlu0 %2047 }
0x1eb5   :  { %3557 = vmatmul.mubr.msk.f32.vlgmr.msra.gmra.mrb[16].mxu1 %vm211_vm3, %v2048_v42 }
0x1eb6   :  { %3834 = vmatpush3.bf16.msra.mxu1 %v4609_v2  ;;  %3575 = vmatprep.mubr.msk.f32.mxu1 %vm4260_vm0, %v4258_v0 }
0x1eb7   :  { %3835 = vmatprep.subr.bf16.mxu1 %v4259_v1 }
0x1eba   :  { %3837 = vmatpush3.bf16.msra.mxu1 %v4621_v12 }
0x1ebb   :  { %3838 = vmatprep.subr.bf16.mxu1 %v4259_v1 }
0x1ebe   :  { %v1943_v30 = vpop.permute.xlu1 %1942  ;;  %3840 = vmatpush3.bf16.msra.mxu1 %v4636_v22 }
0x1ebf   :  { %v1945_v54 = vsel %vm211_vm3, %v1938_v53, %v1943_v30  ;;  %3841 = vmatprep.subr.bf16.mxu1 %v4259_v1 }
0x1ec0   :  { %v1947_v55 = vrot.slane %v1945_v54, 6 }
0x1ec2   :  { %3546 = vmatmul.mubr.msk.f32.vlgmr.msra.gmra.mrb[22].mxu0 %vm1302_vm8, %v1947_v55  ;;  %3843 = vmatpush3.bf16.msra.mxu1 %v4650_v7 }
0x1ec3   :  { %3846 = vmatpush3.bf16.msra.mxu0 %v4548_v60  ;;  %3586 = vmatprep.mubr.msk.f32.mxu0 %vm4260_vm0, %v4258_v0 }
0x1ec4   :  { %3847 = vmatprep.subr.bf16.mxu0 %v4259_v1  ;;  %3862 = vmatprep.subr.bf16.mxu1 %v4259_v1 }
0x1ec7   :  { %3849 = vmatpush3.bf16.msra.mxu0 %v4558_v3 }
0x1ec8   :  { %3850 = vmatprep.subr.bf16.mxu0 %v4259_v1 }
0x1f88   :  { %v2117_v56 = vpop.f32.mrb[16].mxu1 }
0x1f89   :  { %v2121_v57 = vadd.f32 %v2117_v56, %v4448_v23  ;;  %v3558_v58 = vpop.f32.mrb[17].mxu1 }
0x1f8b   :  { %4051 = vtanh.f32 %v2121_v57  ;;  %v3155_v5 = vmul.f32 -1.442695, %v2121_v57 }
0x1f95   :  { %v4052_v62 = vpop.eup %4051  ;;  %v2018_v39 = vpop.f32.mrb[22].mxu0 }
0x1f96   :  { %v2019_v61 = vadd.f32 %v2018_v39, %v1948_v59  ;;  %v3547_v63 = vpop.f32.mrb[23].mxu0  ;;  %2134 = vrot.lane.b32.xlu0 %v4052_v62, %s4261_s2 }
0x1f98   :  { %4053 = vtanh.f32 %v2019_v61  ;;  %v3153_v6 = vmul.f32 -1.442695, %v2019_v61 }
0x1f99   :  { %4055 = vpow2.f32 %v3155_v5 }
0x1f9a   :  { %4057 = vpow2.f32 %v3153_v6 }
0x1fa2   :  { %v4054_v4 = vpop.eup %4053 }
0x1fa3   :  { %2031 = vrot.lane.b32.xlu1 %v4054_v4, %s4261_s2  ;;  %v4056_v10 = vpop.eup %4055 }
0x1fa4   :  { %v2125_v15 = vadd.f32 1.0, %v4056_v10  ;;  %v4058_v16 = vpop.eup %4057 }
0x1fa5   :  { %v2025_v19 = vadd.f32 1.0, %v4058_v16 }
0x1fa6   :  { %4059 = vrcp.f32 %v2125_v15 }
0x1fa7   :  { %4061 = vrcp.f32 %v2025_v19 }
0x1fb0   :  { %v4060_v38 = vpop.eup %4059 }
0x1fb1   :  { %v4062_v18 = vpop.eup %4061  ;;  %v2132_v28 = vmul.f32 %v4060_v38, %v2130_v27 }
0x1fb2   :  { %v2029_v11 = vmul.f32 %v4062_v18, %v4761_v8 }
0x2008   :  { %v2135_v20 = vpop.permute.xlu0 %2134 }
0x2009   :  { %v2137_v24 = vmul.f32 %v4060_v38, %v2135_v20 }
0x200b   :  { %2139 = vrot.lane.b32.xlu0 %v2137_v24, %s4262_s7 }
0x2015   :  { %v2032_v21 = vpop.permute.xlu1 %2031 }
0x2016   :  { %v2034_v25 = vmul.f32 %v4062_v18, %v2032_v21 }
0x2018   :  { %2036 = vrot.lane.b32.xlu1 %v2034_v25, %s4262_s7 }
0x207d   :  { %v2140_v9 = vpop.permute.xlu0 %2139 }
0x207e   :  { %v4795_v29 = vadd.f32 %v2140_v9, %v2132_v28 }
0x2080   :  { %4063 = vtanh.f32 %v4795_v29  ;;  %v2339_v63 = vrot.slane %v4795_v29, 6 }
0x208a   :  { %v4064_v31 = vpop.eup %4063  ;;  %v2037_v32 = vpop.permute.xlu1 %2036 }
0x208b   :  { %v4799_v33 = vadd.f32 %v2037_v32, %v2029_v11  ;;  %2145 = vrot.lane.b32.xlu0 %v4064_v31, %s4261_s2 }
0x208d   :  { %4065 = vtanh.f32 %v4799_v33 }
0x2097   :  { %v4066_v37 = vpop.eup %4065 }
0x2098   :  { %2042 = vrot.lane.b32.xlu1 %v4066_v37, %s4261_s2 }
0x20fd   :  { %v2146_v40 = vpop.permute.xlu0 %2145 }
0x20fe   :  { %v2148_v41 = vmul.f32 %v4060_v38, %v2146_v40 }
0x2100   :  { %2150 = vrot.lane.b32.xlu1 %v2148_v41, %s4262_s7  ;;  %v2371_v41 = vrot.slane %v4670_v34, 2 }
0x210a   :  { %v2043_v43 = vpop.permute.xlu1 %2042 }
0x210b   :  { %v2045_v44 = vmul.f32 %v4062_v18, %v2043_v43 }
0x210d   :  { %2154 = vrot.lane.b32.xlu0 %v2045_v44, %s4261_s2 }
0x2172   :  { %v2151_v17 = vpop.permute.xlu1 %2150 }
0x2173   :  { %3587 = vmatmul.mubr.msk.f32.vlgmr.msra.gmra.mrb[24].mxu0 %vm211_vm3, %v2151_v17 }
0x2174   :  { %3852 = vmatpush3.bf16.msra.mxu0 %v4609_v2  ;;  %3605 = vmatprep.mubr.msk.f32.mxu0 %vm4260_vm0, %v4258_v0 }
0x2175   :  { %3853 = vmatprep.subr.bf16.mxu0 %v4259_v1 }
0x2178   :  { %3855 = vmatpush3.bf16.msra.mxu0 %v4621_v12 }
0x2179   :  { %3856 = vmatprep.subr.bf16.mxu0 %v4259_v1 }
0x217c   :  { %3858 = vmatpush3.bf16.msra.mxu0 %v4636_v22 }
0x217d   :  { %3859 = vmatprep.subr.bf16.mxu0 %v4259_v1 }
0x217f   :  { %v2155_v45 = vpop.permute.xlu0 %2154 }
0x2180   :  { %v2157_v46 = vsel %vm211_vm3, %v2151_v17, %v2155_v45  ;;  %3861 = vmatpush3.bf16.msra.mxu0 %v4650_v7 }
0x2181   :  { %3576 = vmatmul.mubr.msk.f32.vlgmr.msra.gmra.mrb[18].mxu1 %vm1302_vm8, %v2157_v46  ;;  %3880 = vmatprep.subr.bf16.mxu0 %v4259_v1 }
0x2182   :  { %3864 = vmatpush3.bf16.msra.mxu1 %v4548_v60  ;;  %3616 = vmatprep.mubr.msk.f32.mxu1 %vm4260_vm0, %v4258_v0 }
0x2183   :  { %3865 = vmatprep.subr.bf16.mxu1 %v4259_v1 }
0x2186   :  { %3867 = vmatpush3.bf16.msra.mxu1 %v4558_v3 }
0x2187   :  { %3868 = vmatprep.subr.bf16.mxu1 %v4259_v1 }
0x2246   :  { %v2323_v47 = vpop.f32.mrb[24].mxu0 }
0x2247   :  { %v2328_v8 = vrot.slane %v2323_v47, 6  ;;  %v3588_v26 = vpop.f32.mrb[25].mxu0 }
0x2249   :  { %v2330_v48 = vadd.f32 %v2328_v8, %v4448_v23 }
0x224b   :  { %4067 = vtanh.f32 %v2330_v48  ;;  %v3159_v53 = vmul.f32 -1.442695, %v2330_v48 }
0x2254   :  { %v2227_v49 = vpop.f32.mrb[18].mxu1 }
0x2255   :  { %v4068_v50 = vpop.eup %4067  ;;  %v2228_v51 = vadd.f32 %v2227_v49, %v4670_v34  ;;  %v3577_v52 = vpop.f32.mrb[19].mxu1 }
0x2256   :  { %2343 = vrot.lane.b32.xlu0 %v4068_v50, %s4261_s2 }
0x2257   :  { %4069 = vtanh.f32 %v2228_v51  ;;  %v3157_v42 = vmul.f32 -1.442695, %v2228_v51 }
0x2258   :  { %4071 = vpow2.f32 %v3159_v53 }
0x2259   :  { %4073 = vpow2.f32 %v3157_v42 }
0x2261   :  { %v4070_v36 = vpop.eup %4069 }
0x2262   :  { %2240 = vrot.lane.b32.xlu1 %v4070_v36, %s4261_s2  ;;  %v4072_v30 = vpop.eup %4071 }
0x2263   :  { %v2334_v54 = vadd.f32 1.0, %v4072_v30  ;;  %v4074_v55 = vpop.eup %4073 }
0x2264   :  { %v2234_v56 = vadd.f32 1.0, %v4074_v55 }
0x2265   :  { %4075 = vrcp.f32 %v2334_v54 }
0x2266   :  { %4077 = vrcp.f32 %v2234_v56 }
0x226f   :  { %v4076_v57 = vpop.eup %4075 }
0x2270   :  { %v4078_v62 = vpop.eup %4077  ;;  %v2341_v4 = vmul.f32 %v4076_v57, %v2339_v63 }
0x2271   :  { %v2238_v10 = vmul.f32 %v4078_v62, %v4799_v33 }
0x22c8   :  { %v2344_v58 = vpop.permute.xlu0 %2343 }
0x22c9   :  { %v2346_v59 = vmul.f32 %v4076_v57, %v2344_v58 }
0x22cb   :  { %2348 = vrot.lane.b32.xlu0 %v2346_v59, %s4262_s7 }
0x22d4   :  { %v2241_v39 = vpop.permute.xlu1 %2240 }
0x22d5   :  { %v2243_v61 = vmul.f32 %v4078_v62, %v2241_v39 }
0x22d7   :  { %2245 = vrot.lane.b32.xlu1 %v2243_v61, %s4262_s7 }
0x233d   :  { %v2349_v5 = vpop.permute.xlu0 %2348 }
0x233e   :  { %v4832_v6 = vadd.f32 %v2349_v5, %v2341_v4 }
0x2340   :  { %4079 = vtanh.f32 %v4832_v6  ;;  %v2556_v42 = vrot.slane %v4832_v6, 6 }
0x2349   :  { %v2246_v15 = vpop.permute.xlu1 %2245 }
0x234a   :  { %v4080_v16 = vpop.eup %4079  ;;  %v4836_v19 = vadd.f32 %v2246_v15, %v2238_v10 }
0x234b   :  { %2354 = vrot.lane.b32.xlu0 %v4080_v16, %s4261_s2 }
0x234c   :  { %4081 = vtanh.f32 %v4836_v19 }
0x2356   :  { %v4082_v38 = vpop.eup %4081 }
0x2357   :  { %2251 = vrot.lane.b32.xlu1 %v4082_v38, %s4261_s2 }
0x23bd   :  { %v2355_v20 = vpop.permute.xlu0 %2354 }
0x23be   :  { %v2357_v24 = vmul.f32 %v4076_v57, %v2355_v20 }
0x23c0   :  { %2359 = vrot.lane.b32.xlu1 %v2357_v24, %s4262_s7  ;;  %v2469_v18 = vrot.slane %v2357_v24, 2 }
0x23c4   :  { %2470 = vrot.lane.b32.xlu1 %v2469_v18, %s4262_s7  ;;  %v2587_v18 = vrot.slane %v4670_v34, 4 }
0x23c9   :  { %v2252_v21 = vpop.permute.xlu1 %2251 }
0x23ca   :  { %v2254_v25 = vmul.f32 %v4078_v62, %v2252_v21 }
0x23cc   :  { %v2363_v27 = vrot.slane %v2254_v25, 6 }
0x23ce   :  { %2364 = vrot.lane.b32.xlu0 %v2363_v27, %s4261_s2 }
0x2432   :  { %v2360_v28 = vpop.permute.xlu1 %2359 }
0x2436   :  { %v2471_v9 = vpop.permute.xlu1 %2470 }
0x2437   :  { %3617 = vmatmul.mubr.msk.f32.vlgmr.msra.gmra.mrb[20].mxu1 %vm211_vm3, %v2471_v9 }
0x2438   :  { %3870 = vmatpush3.bf16.msra.mxu1 %v4609_v2  ;;  %3635 = vmatprep.mubr.msk.f32.mxu1 %vm4260_vm0, %v4258_v0 }
0x2439   :  { %3871 = vmatprep.subr.bf16.mxu1 %v4259_v1 }
0x243c   :  { %3873 = vmatpush3.bf16.msra.mxu1 %v4621_v12 }
0x243d   :  { %3874 = vmatprep.subr.bf16.mxu1 %v4259_v1 }
0x2440   :  { %v2365_v29 = vpop.permute.xlu0 %2364  ;;  %3876 = vmatpush3.bf16.msra.mxu1 %v4636_v22 }
0x2441   :  { %v2367_v11 = vsel %vm211_vm3, %v2360_v28, %v2365_v29  ;;  %3877 = vmatprep.subr.bf16.mxu1 %v4259_v1 }
0x2442   :  { %v2369_v31 = vrot.slane %v2367_v11, 2 }
0x2444   :  { %3606 = vmatmul.mubr.msk.f32.vlgmr.msra.gmra.mrb[26].mxu0 %vm1302_vm8, %v2369_v31  ;;  %3879 = vmatpush3.bf16.msra.mxu1 %v4650_v7 }
0x2445   :  { %3882 = vmatpush3.bf16.msra.mxu0 %v4548_v60  ;;  %3646 = vmatprep.mubr.msk.f32.mxu0 %vm4260_vm0, %v4258_v0 }
0x2446   :  { %3883 = vmatprep.subr.bf16.mxu0 %v4259_v1  ;;  %3898 = vmatprep.subr.bf16.mxu1 %v4259_v1 }
0x2449   :  { %3885 = vmatpush3.bf16.msra.mxu0 %v4558_v3 }
0x244a   :  { %3886 = vmatprep.subr.bf16.mxu0 %v4259_v1 }
0x250a   :  { %v2540_v32 = vpop.f32.mrb[20].mxu1 }
0x250b   :  { %v2545_v33 = vrot.slane %v2540_v32, 4  ;;  %v3618_v37 = vpop.f32.mrb[21].mxu1 }
0x250d   :  { %v2547_v40 = vadd.f32 %v2545_v33, %v4448_v23 }
0x250f   :  { %4083 = vtanh.f32 %v2547_v40  ;;  %v3163_v3 = vmul.f32 -1.442695, %v2547_v40 }
0x2517   :  { %v2441_v60 = vpop.f32.mrb[26].mxu0 }
0x2518   :  { %v2442_v43 = vadd.f32 %v2441_v60, %v2371_v41  ;;  %v3607_v44 = vpop.f32.mrb[27].mxu0 }
0x2519   :  { %v4084_v17 = vpop.eup %4083 }
0x251a   :  { %4085 = vtanh.f32 %v2442_v43  ;;  %2560 = vrot.lane.b32.xlu1 %v4084_v17, %s4261_s2  ;;  %v3161_v46 = vmul.f32 -1.442695, %v2442_v43 }
0x251b   :  { %4087 = vpow2.f32 %v3163_v3 }
0x251c   :  { %4089 = vpow2.f32 %v3161_v46 }
0x2524   :  { %v4086_v45 = vpop.eup %4085 }
0x2525   :  { %2454 = vrot.lane.b32.xlu0 %v4086_v45, %s4261_s2  ;;  %v4088_v47 = vpop.eup %4087 }
0x2526   :  { %v2551_v8 = vadd.f32 1.0, %v4088_v47  ;;  %v4090_v26 = vpop.eup %4089 }
0x2527   :  { %v2448_v48 = vadd.f32 1.0, %v4090_v26  ;;  %v2901_v26 = vld [vmem:[#allocation8] sm:$0xff] }
0x2528   :  { %4091 = vrcp.f32 %v2551_v8 }
0x2529   :  { %4093 = vrcp.f32 %v2448_v48  ;;  %v2902_v48 = vld [vmem:[#allocation8 + $0x8] sm:$0xff] }
0x2532   :  { %v4092_v49 = vpop.eup %4091 }
0x2533   :  { %v4094_v52 = vpop.eup %4093  ;;  %v2558_v30 = vmul.f32 %v4092_v49, %v2556_v42 }
0x2534   :  { %v2452_v56 = vmul.f32 %v4094_v52, %v4836_v19 }
0x258c   :  { %v2561_v50 = vpop.permute.xlu1 %2560 }
0x258d   :  { %v2563_v51 = vmul.f32 %v4092_v49, %v2561_v50 }
0x258f   :  { %2565 = vrot.lane.b32.xlu1 %v2563_v51, %s4262_s7  ;;  %v2903_v51 = vld [vmem:[#allocation8 + $0x10] sm:$0xff] }
0x2597   :  { %v2455_v36 = vpop.permute.xlu0 %2454 }
0x2598   :  { %v2457_v53 = vmul.f32 %v4094_v52, %v2455_v36 }
0x259a   :  { %2459 = vrot.lane.b32.xlu0 %v2457_v53, %s4262_s7 }
0x2601   :  { %v2566_v54 = vpop.permute.xlu1 %2565 }
0x2602   :  { %v4870_v55 = vadd.f32 %v2566_v54, %v2558_v30 }
0x2604   :  { %4095 = vtanh.f32 %v4870_v55  ;;  %v2772_v43 = vrot.slane %v4870_v55, 6 }
0x260c   :  { %v2460_v57 = vpop.permute.xlu0 %2459 }
0x260d   :  { %v4874_v58 = vadd.f32 %v2460_v57, %v2452_v56 }
0x260e   :  { %v4096_v59 = vpop.eup %4095 }
0x260f   :  { %4097 = vtanh.f32 %v4874_v58  ;;  %2571 = vrot.lane.b32.xlu1 %v4096_v59, %s4261_s2 }
0x2619   :  { %v4098_v62 = vpop.eup %4097 }
0x261a   :  { %2465 = vrot.lane.b32.xlu0 %v4098_v62, %s4261_s2 }
0x2681   :  { %v2572_v39 = vpop.permute.xlu1 %2571 }
0x2682   :  { %v2574_v61 = vmul.f32 %v4092_v49, %v2572_v39  ;;  %v3899_v49 = vpack.c.bf16 %v2902_v48, %v2901_v26 }
0x2684   :  { %2576 = vrot.lane.b32.xlu0 %v2574_v61, %s4262_s7  ;;  %v2685_v63 = vrot.slane %v2574_v61, 4  ;;  %v4131_v61 = vld [vmem:[#allocation6] sm:$0x3] }
0x2688   :  { %2686 = vrot.lane.b32.xlu0 %v2685_v63, %s4262_s7  ;;  %v1109_v63 = vrot.slane %v4131_v61, %v101_v14 }
0x268c   :  { %v2466_v4 = vpop.permute.xlu0 %2465 }
0x268d   :  { %v2468_v5 = vmul.f32 %v4094_v52, %v2466_v4  ;;  %v2904_v52 = vld [vmem:[#allocation8 + $0x18] sm:$0xff]  ;;  %v1192_v4 = vadd.f32 %v4672_v35, %v1109_v63 }
0x268e   :  { %v3902_v36 = vpack.c.bf16 %v2904_v52, %v2903_v51  ;;  %v3172_v51 = vld [vmem:[#allocation9] ss:$0 sm:$0xff] }
0x268f   :  { %v2580_v6 = vrot.slane %v2468_v5, 4  ;;  %v2909_v5 = vrot.slane %v1192_v4, 6 }
0x2691   :  { %2581 = vrot.lane.b32.xlu1 %v2580_v6, %s4261_s2 }
0x26f6   :  { %v2577_v10 = vpop.permute.xlu0 %2576 }
0x26fa   :  { %v2687_v15 = vpop.permute.xlu0 %2686 }
0x26fb   :  { %3647 = vmatmul.mubr.msk.f32.vlgmr.msra.gmra.mrb[28].mxu0 %vm211_vm3, %v2687_v15 }
0x26fc   :  { %3888 = vmatpush3.bf16.msra.mxu0 %v4609_v2  ;;  %3665 = vmatprep.mubr.msk.f32.mxu0 %vm4260_vm0, %v4258_v0 }
0x26fd   :  { %3889 = vmatprep.subr.bf16.mxu0 %v4259_v1 }
0x2700   :  { %3891 = vmatpush3.bf16.msra.mxu0 %v4621_v12 }
0x2701   :  { %3892 = vmatprep.subr.bf16.mxu0 %v4259_v1 }
0x2703   :  { %v2582_v16 = vpop.permute.xlu1 %2581 }
0x2704   :  { %v2584_v19 = vsel %vm211_vm3, %v2577_v10, %v2582_v16  ;;  %3894 = vmatpush3.bf16.msra.mxu0 %v4636_v22  ;;  %v2803_v16 = vrot.slane %v4670_v34, 6 }
0x2705   :  { %v2586_v38 = vrot.slane %v2584_v19, 4  ;;  %3895 = vmatprep.subr.bf16.mxu0 %v4259_v1 }
0x2707   :  { %3636 = vmatmul.mubr.msk.f32.vlgmr.msra.gmra.mrb[22].mxu1 %vm1302_vm8, %v2586_v38 }
0x2708   :  { %3676 = vmatprep.mubr.msk.f32.mxu1 %vm4260_vm0, %v4258_v0  ;;  %3897 = vmatpush3.bf16.msra.mxu0 %v4650_v7 }
0x2709   :  { %3900 = vmatpush3.bf16.msra.mxu1 %v3899_v49 }
0x270a   :  { %3901 = vmatprep.subr.bf16.mxu1 %v4259_v1 }
0x270d   :  { %3903 = vmatpush3.bf16.msra.mxu1 %v3902_v36 }
0x270e   :  { %3904 = vmatprep.subr.bf16.mxu1 %v4259_v1 }
0x27ce   :  { %v2756_v2 = vpop.f32.mrb[28].mxu0 }
0x27cf   :  { %v2761_v20 = vrot.slane %v2756_v2, 2  ;;  %v3648_v12 = vpop.f32.mrb[29].mxu0 }
0x27d1   :  { %v2763_v24 = vadd.f32 %v2761_v20, %v4448_v23 }
0x27d3   :  { %4099 = vtanh.f32 %v2763_v24  ;;  %v3167_v9 = vmul.f32 -1.442695, %v2763_v24 }
0x27da   :  { %v2657_v21 = vpop.f32.mrb[22].mxu1 }
0x27db   :  { %v2658_v22 = vadd.f32 %v2657_v21, %v2587_v18  ;;  %v3637_v25 = vpop.f32.mrb[23].mxu1 }
0x27dd   :  { %v4100_v27 = vpop.eup %4099  ;;  %4101 = vtanh.f32 %v2658_v22  ;;  %v3165_v7 = vmul.f32 -1.442695, %v2658_v22 }
0x27de   :  { %2776 = vrot.lane.b32.xlu0 %v4100_v27, %s4261_s2  ;;  %4103 = vpow2.f32 %v3167_v9 }
0x27df   :  { %4105 = vpow2.f32 %v3165_v7 }
0x27e7   :  { %v4102_v28 = vpop.eup %4101 }
0x27e8   :  { %2670 = vrot.lane.b32.xlu1 %v4102_v28, %s4261_s2  ;;  %v4104_v29 = vpop.eup %4103 }
0x27e9   :  { %v2767_v11 = vadd.f32 1.0, %v4104_v29  ;;  %v4106_v23 = vpop.eup %4105 }
0x27ea   :  { %v2664_v31 = vadd.f32 1.0, %v4106_v23  ;;  %v3010_v23 = vld [vmem:[%s4980_s9] sm:$0xff] }
0x27eb   :  { %4107 = vrcp.f32 %v2767_v11 }
0x27ec   :  { %4109 = vrcp.f32 %v2664_v31  ;;  %v3011_v31 = vld [vmem:[%s4980_s9 + $0x8] sm:$0xff] }
0x27f5   :  { %v4108_v32 = vpop.eup %4107 }
0x27f6   :  { %v4110_v40 = vpop.eup %4109  ;;  %v2774_v44 = vmul.f32 %v4108_v32, %v2772_v43 }
0x27f7   :  { %v2668_v3 = vmul.f32 %v4110_v40, %v4874_v58 }
0x2850   :  { %v2777_v33 = vpop.permute.xlu0 %2776 }
0x2851   :  { %v2779_v37 = vmul.f32 %v4108_v32, %v2777_v33  ;;  %v3905_v33 = vpack.c.bf16 %v3011_v31, %v3010_v23 }
0x2853   :  { %2781 = vrot.lane.b32.xlu0 %v2779_v37, %s4262_s7  ;;  %v3013_v37 = vld [vmem:[%s4980_s9 + $0x18] sm:$0xff] }
0x285a   :  { %v2671_v41 = vpop.permute.xlu1 %2670 }
0x285b   :  { %v2673_v60 = vmul.f32 %v4110_v40, %v2671_v41  ;;  %v3014_v41 = vld [vmem:[%s4980_s9 + $0x20] sm:$0xff] }
0x285d   :  { %2675 = vrot.lane.b32.xlu1 %v2673_v60, %s4262_s7  ;;  %v3015_v60 = vld [vmem:[%s4980_s9 + $0x28] sm:$0xff] }
0x285e   :  { %v3911_v43 = vpack.c.bf16 %v3015_v60, %v3014_v41 }
0x28c5   :  { %v2782_v17 = vpop.permute.xlu0 %2781 }
0x28c6   :  { %v2784_v45 = vadd.f32 %v2782_v17, %v2774_v44  ;;  %v3016_v44 = vld [vmem:[%s4980_s9 + $0x30] sm:$0xff]  ;;  %v3017_v17 = vld [vmem:[%s4980_s9 + $0x38] sm:$0xff] }
0x28c8   :  { %4111 = vtanh.f32 %v2784_v45 }
0x28cf   :  { %v2676_v46 = vpop.permute.xlu1 %2675 }
0x28d0   :  { %v4904_v47 = vadd.f32 %v2676_v46, %v2668_v3  ;;  %v3914_v46 = vpack.c.bf16 %v3017_v17, %v3016_v44 }
0x28d2   :  { %v4112_v8 = vpop.eup %4111  ;;  %4113 = vtanh.f32 %v4904_v47 }
0x28d3   :  { %2787 = vrot.lane.b32.xlu0 %v4112_v8, %s4261_s2 }
0x28dc   :  { %v4114_v50 = vpop.eup %4113 }
0x28dd   :  { %2681 = vrot.lane.b32.xlu1 %v4114_v50, %s4261_s2 }
0x2945   :  { %v2788_v53 = vpop.permute.xlu0 %2787 }
0x2946   :  { %v2790_v42 = vmul.f32 %v4108_v32, %v2788_v53  ;;  %v3012_v32 = vld [vmem:[%s4980_s9 + $0x10] sm:$0xff]  ;;  %s4264_s9 = smov [#allocation11]  }
0x2947   :  { %s3106_s13 = sshll.u32 %s4264_s9, 4  ;;  %s3107_s13 = int_to_ptr.vmem [resolvable:$true] %s3106_s13 }
0x2948   :  { %2792 = vrot.lane.b32.xlu1 %v2790_v42, %s4262_s7  ;;  %v2905_v30 = vrot.slane %v2790_v42, 6  ;;  %p4225_p5 = scmp.lt.s32.totalorder %s3107_s13, %s3107_s13 }
0x294c   :  { %2906 = vrot.lane.b32.xlu1 %v2905_v30, %s4262_s7 }
0x294f   :  { %v2682_v54 = vpop.permute.xlu1 %2681 }
0x2950   :  { %v2684_v55 = vmul.f32 %v4110_v40, %v2682_v54  ;;  %v3908_v40 = vpack.c.bf16 %v3013_v37, %v3012_v32 }
0x2952   :  { %v2796_v56 = vrot.slane %v2684_v55, 2 }
0x2954   :  { %2797 = vrot.lane.b32.xlu0 %v2796_v56, %s4261_s2 }
0x29ba   :  { %v2793_v57 = vpop.permute.xlu1 %2792 }
0x29be   :  { %v2907_v58 = vpop.permute.xlu1 %2906 }
0x29bf   :  { %3677 = vmatmul.mubr.msk.f32.vlgmr.msra.gmra.mrb[24].mxu1 %vm211_vm3, %v2907_v58 }
0x29c0   :  { %3695 = vmatprep.mubr.msk.f32.mxu1 %vm4260_vm0, %v4258_v0  ;;  %3906 = vmatpush3.bf16.msra.mxu1 %v3905_v33 }
0x29c1   :  { %3907 = vmatprep.subr.bf16.mxu1 %v4259_v1 }
0x29c4   :  { %3909 = vmatpush3.bf16.msra.mxu1 %v3908_v40 }
0x29c5   :  { %3910 = vmatprep.subr.bf16.mxu1 %v4259_v1 }
0x29c6   :  { %v2798_v59 = vpop.permute.xlu0 %2797 }
0x29c7   :  { %v2800_v62 = vsel %vm211_vm3, %v2793_v57, %v2798_v59 }
0x29c8   :  { %v2802_v39 = vrot.slane %v2800_v62, 6  ;;  %3912 = vmatpush3.bf16.msra.mxu1 %v3911_v43 }
0x29c9   :  { %3913 = vmatprep.subr.bf16.mxu1 %v4259_v1 }
0x29ca   :  { %3666 = vmatmul.mubr.msk.f32.vlgmr.msra.gmra.mrb[30].mxu0 %vm1302_vm8, %v2802_v39 }
0x29cc   :  { %3915 = vmatpush3.bf16.msra.mxu1 %v3914_v46 }
0x2a92   :  { %v2979_v6 = vpop.f32.mrb[24].mxu1 }
0x2a93   :  { %v2980_v10 = vadd.f32 %v2979_v6, %v2909_v5  ;;  %v3678_v15 = vpop.f32.mrb[25].mxu1 }
0x2a95   :  { %v3171_v14 = vmul.f32 -1.442695, %v2980_v10 }
0x2a9d   :  { %v2873_v19 = vpop.f32.mrb[30].mxu0 }
0x2a9e   :  { %v2874_v0 = vadd.f32 %v2873_v19, %v2803_v16  ;;  %v3667_v38 = vpop.f32.mrb[31].mxu0 }
0x2aa0   :  { %4115 = vtanh.f32 %v2874_v0  ;;  %v3169_v13 = vmul.f32 -1.442695, %v2874_v0 }
0x2aa1   :  { %4117 = vtanh.f32 %v2980_v10 }
0x2aa2   :  { %4119 = vpow2.f32 %v3169_v13 }
0x2aa3   :  { %4121 = vpow2.f32 %v3171_v14 }
0x2aaa   :  { %v4116_v2 = vpop.eup %4115 }
0x2aab   :  { %2886 = vrot.lane.b32.xlu0 %v4116_v2, %s4261_s2  ;;  %v4118_v20 = vpop.eup %4117 }
0x2aac   :  { %v4120_v35 = vpop.eup %4119 }
0x2aad   :  { %v2880_v12 = vadd.f32 1.0, %v4120_v35  ;;  %v4122_v24 = vpop.eup %4121 }
0x2aae   :  { %v2986_v18 = vadd.f32 1.0, %v4122_v24 }
0x2aaf   :  { %2991 = vrot.lane.b32.xlu0 %v4118_v20, %s4261_s2  ;;  %4123 = vrcp.f32 %v2880_v12 }
0x2ab0   :  { %4125 = vrcp.f32 %v2986_v18 }
0x2ab9   :  { %v4124_v34 = vpop.eup %4123 }
0x2aba   :  { %v4126_v25 = vpop.eup %4125  ;;  %v2884_v7 = vmul.f32 %v4124_v34, %v4904_v47 }
0x2b1d   :  { %v2887_v21 = vpop.permute.xlu0 %2886 }
0x2b1e   :  { %v2889_v22 = vmul.f32 %v4124_v34, %v2887_v21 }
0x2b20   :  { %2891 = vrot.lane.b32.xlu1 %v2889_v22, %s4262_s7 }
0x2b21   :  { %v2992_v27 = vpop.permute.xlu0 %2991 }
0x2b22   :  { %v2994_v28 = vmul.f32 %v4126_v25, %v2992_v27 }
0x2b24   :  { %4127 = vtanh.f32 %v2994_v28 }
0x2b2e   :  { %v4128_v9 = vpop.eup %4127 }
0x2b2f   :  { %2997 = vrot.lane.b32.xlu0 %v4128_v9, %s4263_s5 }
0x2b92   :  { %v2892_v29 = vpop.permute.xlu1 %2891 }
0x2b93   :  { %v2894_v11 = vadd.f32 %v2892_v29, %v2884_v7 }
0x2b95   :  { %4129 = vtanh.f32 %v2894_v11 }
0x2b9f   :  { %v4130_v45 = vpop.eup %4129 }
0x2ba0   :  { %2897 = vrot.lane.b32.xlu1 %v4130_v45, %s4261_s2 }
0x2ba1   :  { %v2998_v3 = vpop.permute.xlu0 %2997 }
0x2ba2   :  { %v3000_v47 = vmul.f32 %v4126_v25, %v2998_v3 }
0x2ba4   :  { %3006 = vrot.lane.b32.xlu0 %v3000_v47, %s4261_s2  ;;  %s4220_s2 = scalar_lea.vmem %s3107_s13, 32 }
0x2ba5   :  { %p4221_p4 = scmp.ne.s32.totalorder %s3107_s13, %s4220_s2  ;;  %p4226_p6 = scmp.lt.s32.totalorder %s4220_s2, %s4220_s2 }
0x2ba7   :  { %p4227_p7 = por %p4226_p6, %p4225_p5 }
0x2ba9   :  { %p4228_p8 = pnand %p4227_p7, %p4221_p4 }
0x2c12   :  { %v2898_v8 = vpop.permute.xlu1 %2897 }
0x2c13   :  { %v2900_v26 = vmul.f32 %v4124_v34, %v2898_v8 }
0x2c15   :  { %3002 = vrot.lane.b32.xlu1 %v2900_v26, %s4262_s7 }
0x2c16   :  { %v3007_v48 = vpop.permute.xlu0 %3006 }
0x2c87   :  { %v3003_v49 = vpop.permute.xlu1 %3002 }
0x2c88   :  { %v3009_v50 = vsel %vm211_vm3, %v3003_v49, %v3007_v48 }
0x2c89   :  { %3696 = vmatmul.mubr.msk.f32.vlgmr.msra.gmra.mrb[26].mxu1 %vm1302_vm8, %v3009_v50 }
0x2d5c   :  { %v3094_v52 = vpop.f32.mrb[26].mxu1 }
0x2d5d   :  { %v3095_v36 = vadd.f32 %v3172_v51, %v3094_v52  ;;  %v3697_v1 = vpop.f32.mrb[27].mxu1 }
0x2d5f   :  { %3099 = vst.msk [vmem:[#allocation11] sm:$0x3] %vm3098_vm9, %v3095_v36 }
0x2d60   :  { %4231 = shalt.err (!%p4228_p8)
}
0x2d61   :  { %s4232_s6 = scalar_lea.hbm %s4982_s11, 32 }
0x2d62   :  { %p4233_p9 = scmp.ne.s32.totalorder %s4982_s11, %s4232_s6  ;;  %p4236_p10 = scmp.lt.u32.totalorder %s4232_s6, %s4982_s11 }
0x2d64   :  { %p4238_p11 = pnand %p4236_p10, %p4233_p9 }
0x2d66   :  { %4241 = shalt.err (!%p4238_p11)
}
0x2d67   :  { %3109 = dma.vmem_to_hbm [thread:$0]  %s3107_s13, 32, %s4982_s11, [#allocation5]  }
0x2d68   :  { %4248 = dma.done.wait [#allocation5], 32  }
0x2d69   :  { %4249 = vsyncadd [#allocation5], 4294967264 }
0x2d6a   :  { %3113 = vsyncpa [#allocation4], 1 }
0x2d6b   :  { %3114 = vsyncpa [#allocation7], 1 }
0x2d6c   :  { %3115 = vsyncpa [#allocation10], 1 }
0x2d6d   :  { %3116 = vsyncpa [#allocation5], 1 }

</bundles_post_ra>
